<compile_context>
chip_gen: v6e
topology: v6e:2x2x1
jax: 0.10.0
libtpu: 0.0.40
codegen_flags: <defaults>
</compile_context>

<pallas_src>
import jax
import jax.numpy as jnp
from jax.experimental import pallas as pl
from jax.experimental.pallas import tpu as pltpu

F = 4                                      # features: feature_0 .. feature_3
B = 8                                      # batch size
L_MAX = 12                                 # max padded bag length
MAX_FEATURE_LENGTHS = [10, 10, 12, 12]     # PositionWeightedModule max_feature_length per feature
NUM_EMBEDDINGS = [10, 20, 30, 40]          # EmbeddingBagConfig num_embeddings per table
EMBEDDING_DIMS = [4, 8, 12, 16]            # EmbeddingBagConfig embedding_dim per table
N_ROWS = sum(NUM_EMBEDDINGS)               # 100: tightly packed block-diagonal rows (K <= 128)
ROW_OFF = [0, 10, 30, 60]                  # cumsum(NUM_EMBEDDINGS) row offsets
COL_OFF = [0, 4, 12, 24]                   # cumsum(EMBEDDING_DIMS) col offsets
D_TOTAL = sum(EMBEDDING_DIMS)              # 40 = width of pred
D_PAD = 128                                # lane-dense output width (pad 40 -> 128)


def _sparse_arch_kernel(ids_ref, len_ref, pw_ref, tab_ref, out_ref, loss_ref):
    """Fused FP-EBC forward: weighted one-hot x block-diagonal bf16 table, loss fused in epilogue.

    ids_ref (F,B,L) i32 | len_ref (F,B,1) i32 | pw_ref (F,1,L) f32 | tab_ref (N_ROWS,D_PAD) bf16
    out_ref (B,D_PAD) f32 lane-dense | loss_ref (1,1) f32.
    """
    pos = jax.lax.broadcasted_iota(jnp.int32, (B, L_MAX), 1)          # value position within bag
    nidx = jax.lax.broadcasted_iota(jnp.int32, (B, L_MAX, N_ROWS), 2) # packed global id axis (<=128 lanes)

    counts = jnp.zeros((B, N_ROWS), jnp.float32)
    for f in range(F):                       # static unroll over the 4 features
        ids_f = ids_ref[f]                   # (B, L) int32
        lens_f = len_ref[f]                  # (B, 1) int32
        pw_f = pw_ref[f]                     # (1, L) f32
        # PositionWeightedModule: weight = position_weight[pos] if pos < bag_length else 0
        # (mask applied in f32 BEFORE any dtype cast).
        w_f = jnp.where(pos < lens_f, pw_f, 0.0)                           # (B, L) f32
        gid_f = ids_f + ROW_OFF[f]                                          # row in packed table
        # TODO(synk): out-of-range ids (id >= NUM_EMBEDDINGS[f]) silently contribute zero here
        # instead of erroring like a real embedding gather.
        oh = jnp.where(gid_f[:, :, None] == nidx, w_f[:, :, None], 0.0)     # (B, L, 100)
        counts = counts + oh.sum(axis=1)                                    # (B, 100)

    # Single block-diagonal bf16 matmul (f32 accumulate) -> concatenated, lane-dense pred (B, 128).
    # counts values are exact small integers (all-ones position weights), so the bf16 cast is exact.
    pred = jnp.dot(counts.astype(jnp.bfloat16), tab_ref[...],
                   preferred_element_type=jnp.float32)                      # (B, D_PAD) f32
    out_ref[...] = pred
    # Fused loss: padded cols are exact zeros, so sum over the full (B,128) block is safe;
    # divide by the UNpadded element count B*D_TOTAL, not B*D_PAD.
    loss_ref[...] = jnp.sum(pred, keepdims=True) * (1.0 / (B * D_TOTAL))


_COST = pl.CostEstimate(
    flops=2 * B * N_ROWS * D_PAD + 3 * F * B * L_MAX * N_ROWS,
    transcendentals=0,
    bytes_accessed=(F * B * L_MAX * 4) + (F * B * 4) + (F * L_MAX * 4)
                   + (N_ROWS * D_PAD * 2) + (B * D_PAD * 4) + 4,
)


def sparse_arch_forward(ids, lengths, pos_w, tables_bd):
    pred_padded, loss = pl.pallas_call(
        _sparse_arch_kernel,
        out_shape=(jax.ShapeDtypeStruct((B, D_PAD), jnp.float32),
                   jax.ShapeDtypeStruct((1, 1), jnp.float32)),
        in_specs=[pl.BlockSpec(memory_space=pltpu.MemorySpace.VMEM)] * 4,
        out_specs=(pl.BlockSpec(memory_space=pltpu.MemorySpace.VMEM),
                   pl.BlockSpec(memory_space=pltpu.MemorySpace.VMEM)),
        cost_estimate=_COST,
    )(ids, lengths, pos_w, tables_bd)
    # pred = torch.cat([fp_ebc_out[key] for key in feature_0..3], dim=1): already concatenated by
    # the block-diagonal matmul; strip the lane padding (cols >= D_TOTAL are exact zeros).
    pred = pred_padded[:, :D_TOTAL]
    return loss[0, 0], pred


if __name__ == "__main__":
    key = jax.random.PRNGKey(0)
    k_data, k_tab = jax.random.split(key)

    ids_list, len_list = [], []
    for f in range(F):
        kf_len, kf_ids = jax.random.split(jax.random.fold_in(k_data, f))
        lf = jax.random.randint(kf_len, (B,), 1, MAX_FEATURE_LENGTHS[f] + 1)
        idf = jax.random.randint(kf_ids, (B, L_MAX), 0, NUM_EMBEDDINGS[f])
        len_list.append(lf)
        ids_list.append(idf)
    ids = jnp.stack(ids_list).astype(jnp.int32)                       # (F, B, L_MAX)
    lengths = jnp.stack(len_list).astype(jnp.int32)[:, :, None]       # (F, B, 1)

    # PositionWeightedModule initializes position_weight to ones (length = max_feature_length);
    # zero-pad beyond each feature's max length.
    pos_w = jnp.stack([
        jnp.where(jnp.arange(L_MAX) < MAX_FEATURE_LENGTHS[f], 1.0, 0.0)
        for f in range(F)
    ]).astype(jnp.float32)[:, None, :]                                # (F, 1, L_MAX)

    # Tightly packed block-diagonal embedding table (100 rows x 128 lane-padded cols), stored bf16.
    tables_f32 = jnp.zeros((N_ROWS, D_PAD), jnp.float32)
    for f in range(F):
        kf = jax.random.fold_in(k_tab, f)
        t = jax.random.normal(kf, (NUM_EMBEDDINGS[f], EMBEDDING_DIMS[f]), jnp.float32) * 0.1
        tables_f32 = tables_f32.at[ROW_OFF[f]:ROW_OFF[f] + NUM_EMBEDDINGS[f],
                                   COL_OFF[f]:COL_OFF[f] + EMBEDDING_DIMS[f]].set(t)
    tables_bd = tables_f32.astype(jnp.bfloat16)                       # native MXU operand width

    loss, pred = jax.jit(sparse_arch_forward)(ids, lengths, pos_w, tables_bd)
    jax.block_until_ready((loss, pred))
    assert pred.shape == (B, D_TOTAL), pred.shape
    assert loss.shape == (), loss.shape

    # Pure-JAX reference (same bf16-rounded table values, f32 math) to sanity-check the fused kernel.
    tab_ref = tables_bd.astype(jnp.float32)
    pred_ref = jnp.zeros((B, D_PAD), jnp.float32)
    for f in range(F):
        w = jnp.where(jnp.arange(L_MAX)[None, :] < lengths[f], pos_w[f], 0.0)   # (B, L)
        oh = jax.nn.one_hot(ids[f] + ROW_OFF[f], N_ROWS, dtype=jnp.float32)     # (B, L, 100)
        pred_ref = pred_ref + jnp.einsum("bl,bln->bn", w, oh) @ tab_ref
    loss_ref = jnp.mean(pred_ref[:, :D_TOTAL])
    assert jnp.allclose(pred, pred_ref[:, :D_TOTAL], rtol=1e-2, atol=1e-4)
    assert jnp.allclose(loss, loss_ref, rtol=1e-2, atol=1e-4)
    print("KERNEL_OK")
</pallas_src>

<mosaic_0001>
module attributes {stable_mosaic.version = 11 : i64} {
  func.func @_sparse_arch_kernel(%arg0: memref<4x8x12xi32, #tpu.memory_space<vmem>>, %arg1: memref<4x8x1xi32, #tpu.memory_space<vmem>>, %arg2: memref<4x1x12xf32, #tpu.memory_space<vmem>>, %arg3: memref<100x128xbf16, #tpu.memory_space<vmem>>, %arg4: memref<8x128xf32, #tpu.memory_space<vmem>>, %arg5: memref<1x1xf32, #tpu.memory_space<vmem>>) attributes {dimension_semantics = [], scalar_prefetch = 0 : i64, scratch_operands = 0 : i64, tpu.core_type = #tpu.core_type<tc>} {
    %0 = tpu.iota {dimensions = array<i32: 1>} : vector<8x12xi32>
    %1 = tpu.iota {dimensions = array<i32: 2>} : vector<8x12x100xi32>
    %cst = arith.constant 0.000000e+00 : f32
    %2 = vector.broadcast %cst : f32 to vector<8x100xf32>
    %c0 = arith.constant 0 : index
    %c0_0 = arith.constant 0 : index
    %c0_1 = arith.constant 0 : index
    %3 = vector.load %arg0[%c0, %c0_0, %c0_1] : memref<4x8x12xi32, #tpu.memory_space<vmem>>, vector<1x8x12xi32>
    %4 = vector.shape_cast %3 : vector<1x8x12xi32> to vector<8x12xi32>
    %c0_2 = arith.constant 0 : index
    %c0_3 = arith.constant 0 : index
    %c0_4 = arith.constant 0 : index
    %5 = vector.load %arg1[%c0_2, %c0_3, %c0_4] : memref<4x8x1xi32, #tpu.memory_space<vmem>>, vector<1x8x1xi32>
    %6 = vector.shape_cast %5 : vector<1x8x1xi32> to vector<8x1xi32>
    %c0_5 = arith.constant 0 : index
    %c0_6 = arith.constant 0 : index
    %c0_7 = arith.constant 0 : index
    %7 = vector.load %arg2[%c0_5, %c0_6, %c0_7] : memref<4x1x12xf32, #tpu.memory_space<vmem>>, vector<1x1x12xf32>
    %8 = vector.shape_cast %7 : vector<1x1x12xf32> to vector<1x12xf32>
    %9 = vector.broadcast %6 : vector<8x1xi32> to vector<8x12xi32>
    %10 = arith.cmpi slt, %0, %9 : vector<8x12xi32>
    %cst_8 = arith.constant 0.000000e+00 : f32
    %11 = vector.shape_cast %8 : vector<1x12xf32> to vector<1x12xf32>
    %12 = vector.broadcast %11 : vector<1x12xf32> to vector<8x12xf32>
    %13 = vector.broadcast %cst_8 : f32 to vector<8x12xf32>
    %14 = arith.select %10, %12, %13 : vector<8x12xi1>, vector<8x12xf32>
    %c0_i32 = arith.constant 0 : i32
    %15 = vector.broadcast %c0_i32 : i32 to vector<8x12xi32>
    %16 = arith.addi %4, %15 : vector<8x12xi32>
    %17 = vector.shape_cast %16 : vector<8x12xi32> to vector<8x12x1xi32>
    %18 = vector.broadcast %17 : vector<8x12x1xi32> to vector<8x12x100xi32>
    %19 = arith.cmpi eq, %18, %1 : vector<8x12x100xi32>
    %20 = vector.shape_cast %14 : vector<8x12xf32> to vector<8x12x1xf32>
    %cst_9 = arith.constant 0.000000e+00 : f32
    %21 = vector.shape_cast %20 : vector<8x12x1xf32> to vector<8x12x1xf32>
    %22 = vector.broadcast %21 : vector<8x12x1xf32> to vector<8x12x100xf32>
    %23 = vector.broadcast %cst_9 : f32 to vector<8x12x100xf32>
    %24 = arith.select %19, %22, %23 : vector<8x12x100xi1>, vector<8x12x100xf32>
    %cst_10 = arith.constant dense<0.000000e+00> : vector<8x100xf32>
    %25 = vector.multi_reduction <add>, %24, %cst_10 [1] : vector<8x12x100xf32> to vector<8x100xf32>
    %26 = arith.addf %2, %25 : vector<8x100xf32>
    %c1 = arith.constant 1 : index
    %c0_11 = arith.constant 0 : index
    %c0_12 = arith.constant 0 : index
    %27 = vector.load %arg0[%c1, %c0_11, %c0_12] : memref<4x8x12xi32, #tpu.memory_space<vmem>>, vector<1x8x12xi32>
    %28 = vector.shape_cast %27 : vector<1x8x12xi32> to vector<8x12xi32>
    %c1_13 = arith.constant 1 : index
    %c0_14 = arith.constant 0 : index
    %c0_15 = arith.constant 0 : index
    %29 = vector.load %arg1[%c1_13, %c0_14, %c0_15] : memref<4x8x1xi32, #tpu.memory_space<vmem>>, vector<1x8x1xi32>
    %30 = vector.shape_cast %29 : vector<1x8x1xi32> to vector<8x1xi32>
    %c1_16 = arith.constant 1 : index
    %c0_17 = arith.constant 0 : index
    %c0_18 = arith.constant 0 : index
    %31 = vector.load %arg2[%c1_16, %c0_17, %c0_18] : memref<4x1x12xf32, #tpu.memory_space<vmem>>, vector<1x1x12xf32>
    %32 = vector.shape_cast %31 : vector<1x1x12xf32> to vector<1x12xf32>
    %33 = vector.broadcast %30 : vector<8x1xi32> to vector<8x12xi32>
    %34 = arith.cmpi slt, %0, %33 : vector<8x12xi32>
    %cst_19 = arith.constant 0.000000e+00 : f32
    %35 = vector.shape_cast %32 : vector<1x12xf32> to vector<1x12xf32>
    %36 = vector.broadcast %35 : vector<1x12xf32> to vector<8x12xf32>
    %37 = vector.broadcast %cst_19 : f32 to vector<8x12xf32>
    %38 = arith.select %34, %36, %37 : vector<8x12xi1>, vector<8x12xf32>
    %c10_i32 = arith.constant 10 : i32
    %39 = vector.broadcast %c10_i32 : i32 to vector<8x12xi32>
    %40 = arith.addi %28, %39 : vector<8x12xi32>
    %41 = vector.shape_cast %40 : vector<8x12xi32> to vector<8x12x1xi32>
    %42 = vector.broadcast %41 : vector<8x12x1xi32> to vector<8x12x100xi32>
    %43 = arith.cmpi eq, %42, %1 : vector<8x12x100xi32>
    %44 = vector.shape_cast %38 : vector<8x12xf32> to vector<8x12x1xf32>
    %cst_20 = arith.constant 0.000000e+00 : f32
    %45 = vector.shape_cast %44 : vector<8x12x1xf32> to vector<8x12x1xf32>
    %46 = vector.broadcast %45 : vector<8x12x1xf32> to vector<8x12x100xf32>
    %47 = vector.broadcast %cst_20 : f32 to vector<8x12x100xf32>
    %48 = arith.select %43, %46, %47 : vector<8x12x100xi1>, vector<8x12x100xf32>
    %cst_21 = arith.constant dense<0.000000e+00> : vector<8x100xf32>
    %49 = vector.multi_reduction <add>, %48, %cst_21 [1] : vector<8x12x100xf32> to vector<8x100xf32>
    %50 = arith.addf %26, %49 : vector<8x100xf32>
    %c2 = arith.constant 2 : index
    %c0_22 = arith.constant 0 : index
    %c0_23 = arith.constant 0 : index
    %51 = vector.load %arg0[%c2, %c0_22, %c0_23] : memref<4x8x12xi32, #tpu.memory_space<vmem>>, vector<1x8x12xi32>
    %52 = vector.shape_cast %51 : vector<1x8x12xi32> to vector<8x12xi32>
    %c2_24 = arith.constant 2 : index
    %c0_25 = arith.constant 0 : index
    %c0_26 = arith.constant 0 : index
    %53 = vector.load %arg1[%c2_24, %c0_25, %c0_26] : memref<4x8x1xi32, #tpu.memory_space<vmem>>, vector<1x8x1xi32>
    %54 = vector.shape_cast %53 : vector<1x8x1xi32> to vector<8x1xi32>
    %c2_27 = arith.constant 2 : index
    %c0_28 = arith.constant 0 : index
    %c0_29 = arith.constant 0 : index
    %55 = vector.load %arg2[%c2_27, %c0_28, %c0_29] : memref<4x1x12xf32, #tpu.memory_space<vmem>>, vector<1x1x12xf32>
    %56 = vector.shape_cast %55 : vector<1x1x12xf32> to vector<1x12xf32>
    %57 = vector.broadcast %54 : vector<8x1xi32> to vector<8x12xi32>
    %58 = arith.cmpi slt, %0, %57 : vector<8x12xi32>
    %cst_30 = arith.constant 0.000000e+00 : f32
    %59 = vector.shape_cast %56 : vector<1x12xf32> to vector<1x12xf32>
    %60 = vector.broadcast %59 : vector<1x12xf32> to vector<8x12xf32>
    %61 = vector.broadcast %cst_30 : f32 to vector<8x12xf32>
    %62 = arith.select %58, %60, %61 : vector<8x12xi1>, vector<8x12xf32>
    %c30_i32 = arith.constant 30 : i32
    %63 = vector.broadcast %c30_i32 : i32 to vector<8x12xi32>
    %64 = arith.addi %52, %63 : vector<8x12xi32>
    %65 = vector.shape_cast %64 : vector<8x12xi32> to vector<8x12x1xi32>
    %66 = vector.broadcast %65 : vector<8x12x1xi32> to vector<8x12x100xi32>
    %67 = arith.cmpi eq, %66, %1 : vector<8x12x100xi32>
    %68 = vector.shape_cast %62 : vector<8x12xf32> to vector<8x12x1xf32>
    %cst_31 = arith.constant 0.000000e+00 : f32
    %69 = vector.shape_cast %68 : vector<8x12x1xf32> to vector<8x12x1xf32>
    %70 = vector.broadcast %69 : vector<8x12x1xf32> to vector<8x12x100xf32>
    %71 = vector.broadcast %cst_31 : f32 to vector<8x12x100xf32>
    %72 = arith.select %67, %70, %71 : vector<8x12x100xi1>, vector<8x12x100xf32>
    %cst_32 = arith.constant dense<0.000000e+00> : vector<8x100xf32>
    %73 = vector.multi_reduction <add>, %72, %cst_32 [1] : vector<8x12x100xf32> to vector<8x100xf32>
    %74 = arith.addf %50, %73 : vector<8x100xf32>
    %c3 = arith.constant 3 : index
    %c0_33 = arith.constant 0 : index
    %c0_34 = arith.constant 0 : index
    %75 = vector.load %arg0[%c3, %c0_33, %c0_34] : memref<4x8x12xi32, #tpu.memory_space<vmem>>, vector<1x8x12xi32>
    %76 = vector.shape_cast %75 : vector<1x8x12xi32> to vector<8x12xi32>
    %c3_35 = arith.constant 3 : index
    %c0_36 = arith.constant 0 : index
    %c0_37 = arith.constant 0 : index
    %77 = vector.load %arg1[%c3_35, %c0_36, %c0_37] : memref<4x8x1xi32, #tpu.memory_space<vmem>>, vector<1x8x1xi32>
    %78 = vector.shape_cast %77 : vector<1x8x1xi32> to vector<8x1xi32>
    %c3_38 = arith.constant 3 : index
    %c0_39 = arith.constant 0 : index
    %c0_40 = arith.constant 0 : index
    %79 = vector.load %arg2[%c3_38, %c0_39, %c0_40] : memref<4x1x12xf32, #tpu.memory_space<vmem>>, vector<1x1x12xf32>
    %80 = vector.shape_cast %79 : vector<1x1x12xf32> to vector<1x12xf32>
    %81 = vector.broadcast %78 : vector<8x1xi32> to vector<8x12xi32>
    %82 = arith.cmpi slt, %0, %81 : vector<8x12xi32>
    %cst_41 = arith.constant 0.000000e+00 : f32
    %83 = vector.shape_cast %80 : vector<1x12xf32> to vector<1x12xf32>
    %84 = vector.broadcast %83 : vector<1x12xf32> to vector<8x12xf32>
    %85 = vector.broadcast %cst_41 : f32 to vector<8x12xf32>
    %86 = arith.select %82, %84, %85 : vector<8x12xi1>, vector<8x12xf32>
    %c60_i32 = arith.constant 60 : i32
    %87 = vector.broadcast %c60_i32 : i32 to vector<8x12xi32>
    %88 = arith.addi %76, %87 : vector<8x12xi32>
    %89 = vector.shape_cast %88 : vector<8x12xi32> to vector<8x12x1xi32>
    %90 = vector.broadcast %89 : vector<8x12x1xi32> to vector<8x12x100xi32>
    %91 = arith.cmpi eq, %90, %1 : vector<8x12x100xi32>
    %92 = vector.shape_cast %86 : vector<8x12xf32> to vector<8x12x1xf32>
    %cst_42 = arith.constant 0.000000e+00 : f32
    %93 = vector.shape_cast %92 : vector<8x12x1xf32> to vector<8x12x1xf32>
    %94 = vector.broadcast %93 : vector<8x12x1xf32> to vector<8x12x100xf32>
    %95 = vector.broadcast %cst_42 : f32 to vector<8x12x100xf32>
    %96 = arith.select %91, %94, %95 : vector<8x12x100xi1>, vector<8x12x100xf32>
    %cst_43 = arith.constant dense<0.000000e+00> : vector<8x100xf32>
    %97 = vector.multi_reduction <add>, %96, %cst_43 [1] : vector<8x12x100xf32> to vector<8x100xf32>
    %98 = arith.addf %74, %97 : vector<8x100xf32>
    %99 = arith.truncf %98 : vector<8x100xf32> to vector<8x100xbf16>
    %c0_44 = arith.constant 0 : index
    %c0_45 = arith.constant 0 : index
    %100 = vector.load %arg3[%c0_44, %c0_45] : memref<100x128xbf16, #tpu.memory_space<vmem>>, vector<100x128xbf16>
    %cst_46 = arith.constant dense<0.000000e+00> : vector<8x128xf32>
    %101 = tpu.matmul %99, %100, %cst_46 {dimension_numbers = #tpu.dot_dimension_numbers<[1], [0], [0], [1], [0, 0, 1, 1], [], []>} : vector<8x100xbf16>, vector<100x128xbf16>, vector<8x128xf32> -> vector<8x128xf32>
    %c0_47 = arith.constant 0 : index
    %c0_48 = arith.constant 0 : index
    %102 = vector.load %arg4[%c0_47, %c0_48] : memref<8x128xf32, #tpu.memory_space<vmem>>, vector<8x128xf32>
    tpu.vector_store %arg4[%c0_47, %c0_48], %101 {strides = array<i32>} : memref<8x128xf32, #tpu.memory_space<vmem>>, vector<8x128xf32>,
    %103 = vector.shape_cast %101 : vector<8x128xf32> to vector<1x8x128xf32>
    %cst_49 = arith.constant dense<0.000000e+00> : vector<1xf32>
    %104 = vector.multi_reduction <add>, %103, %cst_49 [1, 2] : vector<1x8x128xf32> to vector<1xf32>
    %105 = vector.shape_cast %104 : vector<1xf32> to vector<1x1x1xf32>
    %106 = vector.extract %105[0, 0, 0] : f32 from vector<1x1x1xf32>
    %107 = vector.broadcast %106 : f32 to vector<1x1xf32>
    %cst_50 = arith.constant 3.125000e-03 : f32
    %108 = vector.broadcast %cst_50 : f32 to vector<1x1xf32>
    %109 = arith.mulf %107, %108 : vector<1x1xf32>
    %c0_51 = arith.constant 0 : index
    %c0_52 = arith.constant 0 : index
    %110 = vector.load %arg5[%c0_51, %c0_52] : memref<1x1xf32, #tpu.memory_space<vmem>>, vector<1x1xf32>
    tpu.vector_store %arg5[%c0_51, %c0_52], %109 {strides = array<i32>} : memref<1x1xf32, #tpu.memory_space<vmem>>, vector<1x1xf32>,
    return
  }
}

</mosaic_0001>

<bundles_post_ra>
// kernel: sparse_arch_forward.1
= control target key start
LH: loop header
LB: loop body
LE: loop exit
PB: predicated region body
PF: predicated region fallthrough
CT: control target
= control target key end

     0   :  { %11 = vsyncpa [#allocation3], 0  ;;  %s2181_s0 = inlined_call_operand.vmem [shape: s32[4,8,12], index: 0, kind: input, shape index: {}]   ;;  %s2182_s1 = inlined_call_operand.vmem [shape: s32[4,8,1], index: 1, kind: input, shape index: {}]   ;;  %s2183_s2 = inlined_call_operand.vmem [shape: f32[4,1,12], index: 2, kind: input, shape index: {}]   ;;  %s2184_s3 = inlined_call_operand.hbm [shape: bf16[100,128], index: 3, kind: input, shape index: {}]   ;;  %s2185_s4 = inlined_call_operand.hbm [shape: f32[8,128], index: 4, kind: output, shape index: {0}]   ;;  %s2186_s5 = inlined_call_operand.hbm [shape: f32[1,1], index: 5, kind: output, shape index: {1}]  }
   0x1   :  { %12 = vsyncpa [#allocation4], 0 }
   0x2   :  { %13 = vsyncpa [#allocation7], 0  ;;  %s1573_s18 = smov [#allocation2]  }
   0x3   :  { %s25_s19 = sshll.u32 %s1573_s18, 4  ;;  %s26_s19 = int_to_ptr.vmem [resolvable:$true] %s25_s19 }
   0x4   :  { %s1515_s20 = scalar_lea.vmem %s26_s19, 832  ;;  %p1520_p1 = scmp.lt.s32.totalorder %s26_s19, %s26_s19 }
   0x5   :  { %p1516_p0 = scmp.ne.s32.totalorder %s26_s19, %s1515_s20  ;;  %p1521_p2 = scmp.lt.s32.totalorder %s1515_s20, %s1515_s20 }
   0x7   :  { %p1522_p3 = por %p1521_p2, %p1520_p1 }
   0x9   :  { %p1523_p4 = pnand %p1522_p3, %p1516_p0 }
   0xb   :  { %1526 = shalt.err (!%p1523_p4)
}
   0xc   :  { %s1574_s21 = smov 64   ;;  %s1575_s22 = smov 4  }
   0xd   :  { %31 = dma.hbm_to_vmem [thread:$0]  %s2184_s3, 832, %s26_s19, [#allocation3], %s1574_s21, %s1574_s21, %s1575_s22  }
   0xe   :  { %1567 = dma.done.wait [#allocation3], 832  }
   0xf   :  { %1568 = vsyncadd [#allocation3], 4294966464  ;;  %v36_v0 = vlaneseq  ;;  %v1576_v1 = vmov 0   ;;  %v39_v3 = vld [vmem:[%s2182_s1] sm:$0xff]  ;;  %v1447_v4 = vld [vmem:[%s2182_s1 + $0x10] sm:$0xff]  ;;  %vm262_vm4 = vcmask 814080  }
  0x10   :  { %1498 = vset.pattern.permute.xlu0 %v1576_v1  ;;  %1499 = vset.pattern.permute.xlu1 %v1576_v1  ;;  %v1443_v6 = vld [vmem:[%s2182_s1 + $0x8] sm:$0xff]  ;;  %v1451_v7 = vld [vmem:[%s2182_s1 + $0x18] sm:$0xff]  ;;  %v1635_v8 = vld [vmem:[%s2181_s0] sm:$0xff]  ;;  %vm260_vm5 = vcmask 818176  }
  0x11   :  { %v1615_v2 = vshrl.u32 %v36_v0, 7  ;;  %42 = vperm.xlu0 %1498, %v39_v3   ;;  %655 = vperm.xlu1 %1499, %v1447_v4   ;;  %v1442_v11 = vld [vmem:[%s2181_s0 + $0x8] sm:$0xff]  ;;  %v1446_v21 = vld [vmem:[%s2181_s0 + $0x10] sm:$0xff]  ;;  %v1450_v33 = vld [vmem:[%s2181_s0 + $0x18] sm:$0xff]  ;;  %v1709_v40 = vand.u32 127, %v36_v0 }
  0x12   :  { %v1647_v13 = vadd.s32 10, %v1442_v11  ;;  %v1670_v23 = vadd.s32 30, %v1446_v21  ;;  %v1697_v35 = vadd.s32 60, %v1450_v33  ;;  %v1441_v41 = vld [vmem:[%s2183_s2] ss:$0 sm:$0xff] }
  0x13   :  { %v1624_v5 = vsub.s32 0, %v1615_v2  ;;  %v1640_v10 = vsub.s32 1, %v1615_v2  ;;  %v1654_v16 = vsub.s32 2, %v1615_v2  ;;  %v1661_v19 = vsub.s32 3, %v1615_v2  ;;  %v1445_v48 = vld [vmem:[%s2183_s2 + $0x1] ss:$0 sm:$0xff] }
  0x14   :  { %v1677_v26 = vsub.s32 4, %v1615_v2  ;;  %v1686_v30 = vsub.s32 5, %v1615_v2  ;;  %v1704_v38 = vsub.s32 6, %v1615_v2  ;;  %v1449_v63 = vld [vmem:[%s2183_s2 + $0x2] ss:$0 sm:$0xff] }
  0x15   :  { %349 = vperm.xlu0 %1498, %v1443_v6   ;;  %961 = vperm.xlu1 %1499, %v1451_v7   ;;  %v55_v9 = vrot.slane %v1635_v8, %v1624_v5  ;;  %v66_v12 = vrot.slane %v1635_v8, %v1640_v10  ;;  %v363_v14 = vrot.slane %v1647_v13, %v1624_v5 }
  0x16   :  { %v374_v15 = vrot.slane %v1647_v13, %v1640_v10  ;;  %v77_v17 = vrot.slane %v1635_v8, %v1654_v16  ;;  %v385_v18 = vrot.slane %v1647_v13, %v1654_v16  ;;  %v88_v20 = vrot.slane %v1635_v8, %v1661_v19 }
  0x17   :  { %v396_v22 = vrot.slane %v1647_v13, %v1661_v19  ;;  %v669_v24 = vrot.slane %v1670_v23, %v1624_v5  ;;  %v680_v25 = vrot.slane %v1670_v23, %v1640_v10  ;;  %v99_v27 = vrot.slane %v1635_v8, %v1677_v26 }
  0x18   :  { %v407_v28 = vrot.slane %v1647_v13, %v1677_v26  ;;  %v691_v29 = vrot.slane %v1670_v23, %v1654_v16  ;;  %v110_v31 = vrot.slane %v1635_v8, %v1686_v30  ;;  %v418_v32 = vrot.slane %v1647_v13, %v1686_v30 }
  0x19   :  { %61 = vbcast.lane.b32.xlu1 %v55_v9, 264  ;;  %57 = vbcast.lane.b32.xlu0 %v55_v9, 256  ;;  %v702_v34 = vrot.slane %v1670_v23, %v1661_v19  ;;  %v975_v36 = vrot.slane %v1697_v35, %v1624_v5  ;;  %v986_v37 = vrot.slane %v1697_v35, %v1640_v10 }
  0x1a   :  { %v121_v39 = vrot.slane %v1635_v8, %v1704_v38  ;;  %v713_v33 = vrot.slane %v1670_v23, %v1677_v26 }
  0x1d   :  { %72 = vbcast.lane.b32.xlu1 %v66_v12, 264  ;;  %68 = vbcast.lane.b32.xlu0 %v66_v12, 256 }
  0x21   :  { %369 = vbcast.lane.b32.xlu1 %v363_v14, 264  ;;  %365 = vbcast.lane.b32.xlu0 %v363_v14, 256 }
  0x25   :  { %380 = vbcast.lane.b32.xlu1 %v374_v15, 264  ;;  %376 = vbcast.lane.b32.xlu0 %v374_v15, 256 }
  0x29   :  { %83 = vbcast.lane.b32.xlu1 %v77_v17, 264  ;;  %79 = vbcast.lane.b32.xlu0 %v77_v17, 256 }
  0x2d   :  { %391 = vbcast.lane.b32.xlu1 %v385_v18, 264  ;;  %387 = vbcast.lane.b32.xlu0 %v385_v18, 256 }
  0x31   :  { %94 = vbcast.lane.b32.xlu1 %v88_v20, 264  ;;  %90 = vbcast.lane.b32.xlu0 %v88_v20, 256 }
  0x35   :  { %402 = vbcast.lane.b32.xlu1 %v396_v22, 264  ;;  %398 = vbcast.lane.b32.xlu0 %v396_v22, 256 }
  0x39   :  { %675 = vbcast.lane.b32.xlu1 %v669_v24, 264  ;;  %671 = vbcast.lane.b32.xlu0 %v669_v24, 256 }
  0x3d   :  { %686 = vbcast.lane.b32.xlu1 %v680_v25, 264  ;;  %682 = vbcast.lane.b32.xlu0 %v680_v25, 256 }
  0x41   :  { %105 = vbcast.lane.b32.xlu1 %v99_v27, 264  ;;  %101 = vbcast.lane.b32.xlu0 %v99_v27, 256 }
  0x45   :  { %413 = vbcast.lane.b32.xlu1 %v407_v28, 264  ;;  %409 = vbcast.lane.b32.xlu0 %v407_v28, 256  ;;  %v429_v28 = vrot.slane %v1647_v13, %v1704_v38 }
  0x49   :  { %697 = vbcast.lane.b32.xlu1 %v691_v29, 264  ;;  %693 = vbcast.lane.b32.xlu0 %v691_v29, 256 }
  0x4d   :  { %116 = vbcast.lane.b32.xlu1 %v110_v31, 264  ;;  %112 = vbcast.lane.b32.xlu0 %v110_v31, 256 }
  0x51   :  { %424 = vbcast.lane.b32.xlu1 %v418_v32, 264  ;;  %420 = vbcast.lane.b32.xlu0 %v418_v32, 256 }
  0x55   :  { %708 = vbcast.lane.b32.xlu1 %v702_v34, 264  ;;  %704 = vbcast.lane.b32.xlu0 %v702_v34, 256 }
  0x59   :  { %981 = vbcast.lane.b32.xlu1 %v975_v36, 264  ;;  %977 = vbcast.lane.b32.xlu0 %v975_v36, 256 }
  0x5d   :  { %992 = vbcast.lane.b32.xlu1 %v986_v37, 264  ;;  %988 = vbcast.lane.b32.xlu0 %v986_v37, 256 }
  0x61   :  { %127 = vbcast.lane.b32.xlu1 %v121_v39, 264  ;;  %123 = vbcast.lane.b32.xlu0 %v121_v39, 256 }
  0x8c   :  { %v43_v42 = vpop.permute.xlu0 %42  ;;  %v656_v43 = vpop.permute.xlu1 %655 }
  0x8d   :  { %vm44_vm0 = vcmp.lt.s32.totalorder %v1709_v40, %v43_v42  ;;  %vm657_vm2 = vcmp.lt.s32.totalorder %v1709_v40, %v656_v43  ;;  %v1453_v42 = vld [vmem:[%s2183_s2 + $0x3] ss:$0 sm:$0xff]  ;;  %v997_v43 = vrot.slane %v1697_v35, %v1654_v16  ;;  %s1579_s2 = smov [#allocation5]  }
  0x8e   :  { %v1715_v44 = vsel %vm44_vm0, %v1441_v41, 0.0  ;;  %v1763_v4 = vsel %vm657_vm2, %v1449_v63, 0.0  ;;  %s1418_s21 = sshll.u32 %s1579_s2, 4  ;;  %s1419_s21 = int_to_ptr.vmem [resolvable:$true] %s1418_s21 }
  0x8f   :  { %v159_v45 = vrot.slane %v1715_v44, %v1624_v5  ;;  %v170_v49 = vrot.slane %v1715_v44, %v1640_v10  ;;  %v181_v59 = vrot.slane %v1715_v44, %v1654_v16  ;;  %v192_v0 = vrot.slane %v1715_v44, %v1661_v19  ;;  %s1527_s22 = scalar_lea.vmem %s1419_s21, 128  ;;  %p1532_p6 = scmp.lt.s32.totalorder %s1419_s21, %s1419_s21 }
  0x90   :  { %v350_v46 = vpop.permute.xlu0 %349  ;;  %v1719_v47 = vpop.permute.xlu1 %961  ;;  %v773_v7 = vrot.slane %v1763_v4, %v1624_v5  ;;  %v784_v12 = vrot.slane %v1763_v4, %v1640_v10  ;;  %v203_v17 = vrot.slane %v1715_v44, %v1677_v26  ;;  %v795_v22 = vrot.slane %v1763_v4, %v1654_v16  ;;  %p1528_p5 = scmp.ne.s32.totalorder %s1419_s21, %s1527_s22  ;;  %p1533_p7 = scmp.lt.s32.totalorder %s1527_s22, %s1527_s22 }
  0x91   :  { %vm351_vm1 = vcmp.lt.s32.totalorder %v1709_v40, %v350_v46  ;;  %165 = vbcast.lane.b32.xlu1 %v159_v45, 264  ;;  %161 = vbcast.lane.b32.xlu0 %v159_v45, 256  ;;  %v214_v27 = vrot.slane %v1715_v44, %v1686_v30  ;;  %v806_v37 = vrot.slane %v1763_v4, %v1661_v19 }
  0x92   :  { %v1727_v50 = vsel %vm351_vm1, %v1445_v48, 0.0  ;;  %vm963_vm3 = vcmp.lt.s32.totalorder %v1709_v40, %v1719_v47  ;;  %p1534_p8 = por %p1533_p7, %p1532_p6 }
  0x93   :  { %v467_v53 = vrot.slane %v1727_v50, %v1624_v5  ;;  %v478_v56 = vrot.slane %v1727_v50, %v1640_v10  ;;  %v489_v60 = vrot.slane %v1727_v50, %v1654_v16  ;;  %v500_v6 = vrot.slane %v1727_v50, %v1661_v19 }
  0x94   :  { %v1729_v51 = vpop.permute.xlu1 %61  ;;  %v1731_v52 = vpop.permute.xlu0 %57  ;;  %v511_v18 = vrot.slane %v1727_v50, %v1677_v26  ;;  %v522_v32 = vrot.slane %v1727_v50, %v1686_v30  ;;  %v1822_v45 = vsel %vm963_vm3, %v1453_v42, 0.0  ;;  %p1535_p9 = pnand %p1534_p8, %p1528_p5 }
  0x95   :  { %176 = vbcast.lane.b32.xlu1 %v170_v49, 264  ;;  %172 = vbcast.lane.b32.xlu0 %v170_v49, 256  ;;  %v1079_v49 = vrot.slane %v1822_v45, %v1624_v5  ;;  %v1090_v47 = vrot.slane %v1822_v45, %v1640_v10  ;;  %v225_v10 = vrot.slane %v1715_v44, %v1704_v38 }
  0x96   :  { %vm141_vm6 = vcmp.eq.s32.totalorder %v1729_v51, %v1709_v40  ;;  %vm140_vm7 = vcmp.eq.s32.totalorder %v1731_v52, %v1709_v40 }
  0x98   :  { %v1735_v54 = vpop.permute.xlu1 %72  ;;  %v1737_v55 = vpop.permute.xlu0 %68 }
  0x99   :  { %473 = vbcast.lane.b32.xlu1 %v467_v53, 264  ;;  %469 = vbcast.lane.b32.xlu0 %v467_v53, 256  ;;  %v1833_v53 = vsub.s32 7, %v1615_v2  ;;  %vm143_vm8 = vcmp.eq.s32.totalorder %v1735_v54, %v1709_v40  ;;  %vm142_vm9 = vcmp.eq.s32.totalorder %v1737_v55, %v1709_v40  ;;  %v735_v54 = vrot.slane %v1670_v23, %v1704_v38 }
  0x9b   :  { %v440_v2 = vrot.slane %v1647_v13, %v1833_v53  ;;  %v817_v13 = vrot.slane %v1763_v4, %v1677_v26 }
  0x9c   :  { %v1741_v57 = vpop.permute.xlu1 %369  ;;  %v1743_v58 = vpop.permute.xlu0 %365 }
  0x9d   :  { %484 = vbcast.lane.b32.xlu1 %v478_v56, 264  ;;  %480 = vbcast.lane.b32.xlu0 %v478_v56, 256  ;;  %vm449_vm10 = vcmp.eq.s32.totalorder %v1741_v57, %v1709_v40  ;;  %vm448_vm11 = vcmp.eq.s32.totalorder %v1743_v58, %v1709_v40  ;;  %v828_v58 = vrot.slane %v1763_v4, %v1686_v30 }
  0xa0   :  { %v1749_v61 = vpop.permute.xlu1 %380  ;;  %v1751_v62 = vpop.permute.xlu0 %376 }
  0xa1   :  { %187 = vbcast.lane.b32.xlu1 %v181_v59, 264  ;;  %183 = vbcast.lane.b32.xlu0 %v181_v59, 256  ;;  %vm451_vm12 = vcmp.eq.s32.totalorder %v1749_v61, %v1709_v40  ;;  %vm450_vm13 = vcmp.eq.s32.totalorder %v1751_v62, %v1709_v40 }
  0xa4   :  { %v1759_v1 = vpop.permute.xlu1 %83  ;;  %v1761_v3 = vpop.permute.xlu0 %79 }
  0xa5   :  { %495 = vbcast.lane.b32.xlu1 %v489_v60, 264  ;;  %491 = vbcast.lane.b32.xlu0 %v489_v60, 256  ;;  %v132_v60 = vrot.slane %v1635_v8, %v1833_v53  ;;  %v533_v8 = vrot.slane %v1727_v50, %v1704_v38  ;;  %vm145_vm14 = vcmp.eq.s32.totalorder %v1759_v1, %v1709_v40 }
  0xa6   :  { %vm144_vm15 = vcmp.eq.s32.totalorder %v1761_v3, %v1709_v40  ;;  %v1112_v1 = vrot.slane %v1822_v45, %v1661_v19 }
  0xa8   :  { %v1769_v9 = vpop.permute.xlu1 %391  ;;  %v1771_v11 = vpop.permute.xlu0 %387 }
  0xa9   :  { %198 = vbcast.lane.b32.xlu1 %v192_v0, 264  ;;  %194 = vbcast.lane.b32.xlu0 %v192_v0, 256  ;;  %vm453_vm0 = vcmp.eq.s32.totalorder %v1769_v9, %v1709_v40  ;;  %vm452_vm1 = vcmp.eq.s32.totalorder %v1771_v11, %v1709_v40 }
  0xac   :  { %v1775_v14 = vpop.permute.xlu1 %94  ;;  %v1777_v15 = vpop.permute.xlu0 %90 }
  0xad   :  { %506 = vbcast.lane.b32.xlu1 %v500_v6, 264  ;;  %502 = vbcast.lane.b32.xlu0 %v500_v6, 256  ;;  %vm147_vm2 = vcmp.eq.s32.totalorder %v1775_v14, %v1709_v40  ;;  %vm146_vm3 = vcmp.eq.s32.totalorder %v1777_v15, %v1709_v40 }
  0xb0   :  { %v1783_v20 = vpop.permute.xlu1 %402  ;;  %v1785_v21 = vpop.permute.xlu0 %398 }
  0xb1   :  { %779 = vbcast.lane.b32.xlu1 %v773_v7, 264  ;;  %775 = vbcast.lane.b32.xlu0 %v773_v7, 256  ;;  %v724_v7 = vrot.slane %v1670_v23, %v1686_v30 }
  0xb4   :  { %v1789_v24 = vpop.permute.xlu1 %675  ;;  %v1791_v25 = vpop.permute.xlu0 %671 }
  0xb5   :  { %790 = vbcast.lane.b32.xlu1 %v784_v12, 264  ;;  %786 = vbcast.lane.b32.xlu0 %v784_v12, 256 }
  0xb8   :  { %v1797_v29 = vpop.permute.xlu1 %686  ;;  %v1799_v31 = vpop.permute.xlu0 %682 }
  0xb9   :  { %209 = vbcast.lane.b32.xlu1 %v203_v17, 264  ;;  %205 = vbcast.lane.b32.xlu0 %v203_v17, 256 }
  0xbc   :  { %v1805_v34 = vpop.permute.xlu1 %105  ;;  %v1807_v36 = vpop.permute.xlu0 %101 }
  0xbd   :  { %517 = vbcast.lane.b32.xlu1 %v511_v18, 264  ;;  %513 = vbcast.lane.b32.xlu0 %v511_v18, 256 }
  0xc0   :  { %v1811_v39 = vpop.permute.xlu1 %413  ;;  %v1813_v41 = vpop.permute.xlu0 %409 }
  0xc1   :  { %801 = vbcast.lane.b32.xlu1 %v795_v22, 264  ;;  %797 = vbcast.lane.b32.xlu0 %v795_v22, 256 }
  0xc4   :  { %v1824_v46 = vpop.permute.xlu1 %697  ;;  %v1826_v48 = vpop.permute.xlu0 %693 }
  0xc5   :  { %220 = vbcast.lane.b32.xlu1 %v214_v27, 264  ;;  %216 = vbcast.lane.b32.xlu0 %v214_v27, 256  ;;  %v1008_v27 = vrot.slane %v1697_v35, %v1661_v19  ;;  %v746_v19 = vrot.slane %v1670_v23, %v1833_v53 }
  0xc8   :  { %v1835_v56 = vpop.permute.xlu1 %116  ;;  %v1837_v59 = vpop.permute.xlu0 %112 }
  0xc9   :  { %435 = vbcast.lane.b32.xlu1 %v429_v28, 264  ;;  %431 = vbcast.lane.b32.xlu0 %v429_v28, 256 }
  0xcc   :  { %v1841_v5 = vpop.permute.xlu1 %424  ;;  %v1843_v63 = vpop.permute.xlu0 %420 }
  0xcd   :  { %528 = vbcast.lane.b32.xlu1 %v522_v32, 264  ;;  %524 = vbcast.lane.b32.xlu0 %v522_v32, 256 }
  0xd0   :  { %v1849_v0 = vpop.permute.xlu1 %708  ;;  %v1851_v6 = vpop.permute.xlu0 %704 }
  0xd1   :  { %719 = vbcast.lane.b32.xlu1 %v713_v33, 264  ;;  %715 = vbcast.lane.b32.xlu0 %v713_v33, 256  ;;  %v1101_v33 = vrot.slane %v1822_v45, %v1654_v16 }
  0xd4   :  { %v1857_v12 = vpop.permute.xlu1 %981  ;;  %v1859_v17 = vpop.permute.xlu0 %977 }
  0xd5   :  { %812 = vbcast.lane.b32.xlu1 %v806_v37, 264  ;;  %808 = vbcast.lane.b32.xlu0 %v806_v37, 256 }
  0xd8   :  { %v1863_v18 = vpop.permute.xlu1 %992  ;;  %v1865_v22 = vpop.permute.xlu0 %988 }
  0xd9   :  { %1003 = vbcast.lane.b32.xlu1 %v997_v43, 264  ;;  %999 = vbcast.lane.b32.xlu0 %v997_v43, 256  ;;  %v236_v43 = vrot.slane %v1715_v44, %v1833_v53  ;;  %v544_v44 = vrot.slane %v1727_v50, %v1833_v53 }
  0xdc   :  { %v1869_v28 = vpop.permute.xlu1 %127  ;;  %v1871_v32 = vpop.permute.xlu0 %123 }
  0xdd   :  { %1085 = vbcast.lane.b32.xlu1 %v1079_v49, 264  ;;  %1081 = vbcast.lane.b32.xlu0 %v1079_v49, 256 }
  0xe1   :  { %1096 = vbcast.lane.b32.xlu1 %v1090_v47, 264  ;;  %1092 = vbcast.lane.b32.xlu0 %v1090_v47, 256 }
  0xe5   :  { %138 = vbcast.lane.b32.xlu1 %v132_v60, 264  ;;  %134 = vbcast.lane.b32.xlu0 %v132_v60, 256 }
  0xe9   :  { %231 = vbcast.lane.b32.xlu1 %v225_v10, 264  ;;  %227 = vbcast.lane.b32.xlu0 %v225_v10, 256 }
  0xed   :  { %446 = vbcast.lane.b32.xlu1 %v440_v2, 264  ;;  %442 = vbcast.lane.b32.xlu0 %v440_v2, 256 }
  0xf1   :  { %539 = vbcast.lane.b32.xlu1 %v533_v8, 264  ;;  %535 = vbcast.lane.b32.xlu0 %v533_v8, 256 }
  0xf5   :  { %730 = vbcast.lane.b32.xlu1 %v724_v7, 264  ;;  %726 = vbcast.lane.b32.xlu0 %v724_v7, 256 }
  0xf9   :  { %823 = vbcast.lane.b32.xlu1 %v817_v13, 264  ;;  %819 = vbcast.lane.b32.xlu0 %v817_v13, 256 }
  0xfd   :  { %1014 = vbcast.lane.b32.xlu1 %v1008_v27, 264  ;;  %1010 = vbcast.lane.b32.xlu0 %v1008_v27, 256 }
 0x101   :  { %1107 = vbcast.lane.b32.xlu1 %v1101_v33, 264  ;;  %1103 = vbcast.lane.b32.xlu0 %v1101_v33, 256 }
 0x103   :  { %v166_v37 = vpop.permute.xlu1 %165  ;;  %v162_v42 = vpop.permute.xlu0 %161 }
 0x104   :  { %v245_v49 = vsel %vm141_vm6, %v166_v37, 0.0  ;;  %v244_v47 = vsel %vm140_vm7, %v162_v42, 0.0  ;;  %vm455_vm6 = vcmp.eq.s32.totalorder %v1783_v20, %v1709_v40  ;;  %vm454_vm7 = vcmp.eq.s32.totalorder %v1785_v21, %v1709_v40 }
 0x105   :  { %v263_v60 = vsel %vm262_vm4, %v245_v49, 0.0  ;;  %v261_v16 = vsel %vm260_vm5, %v244_v47, 0.0  ;;  %242 = vbcast.lane.b32.xlu1 %v236_v43, 264  ;;  %238 = vbcast.lane.b32.xlu0 %v236_v43, 256 }
 0x106   :  { %v264_v10 = vadd.f32 %v263_v60, %v261_v16 }
 0x107   :  { %v177_v51 = vpop.permute.xlu1 %176  ;;  %v173_v52 = vpop.permute.xlu0 %172 }
 0x108   :  { %v265_v2 = vrot.slane %v264_v10, 4  ;;  %v247_v8 = vsel %vm143_vm8, %v177_v51, 0.0  ;;  %v246_v7 = vsel %vm142_vm9, %v173_v52, 0.0  ;;  %vm755_vm8 = vcmp.eq.s32.totalorder %v1789_v24, %v1709_v40 }
 0x109   :  { %v272_v13 = vsel %vm262_vm4, %v247_v8, 0.0  ;;  %v271_v27 = vsel %vm260_vm5, %v246_v7, 0.0  ;;  %550 = vbcast.lane.b32.xlu1 %v544_v44, 264  ;;  %546 = vbcast.lane.b32.xlu0 %v544_v44, 256  ;;  %vm754_vm9 = vcmp.eq.s32.totalorder %v1791_v25, %v1709_v40 }
 0x10a   :  { %v266_v33 = vadd.f32 %v265_v2, %v264_v10  ;;  %v273_v37 = vadd.f32 %v272_v13, %v271_v27  ;;  %v1019_v13 = vrot.slane %v1697_v35, %v1677_v26 }
 0x10b   :  { %v474_v55 = vpop.permute.xlu1 %473  ;;  %v470_v50 = vpop.permute.xlu0 %469 }
 0x10c   :  { %v274_v42 = vrot.slane %v273_v37, 4  ;;  %v553_v43 = vsel %vm449_vm10, %v474_v55, 0.0  ;;  %v552_v49 = vsel %vm448_vm11, %v470_v50, 0.0  ;;  %v267_v16 = vrot.slane %v266_v33, 2 }
 0x10d   :  { %v569_v47 = vsel %vm262_vm4, %v553_v43, 0.0  ;;  %v568_v60 = vsel %vm260_vm5, %v552_v49, 0.0  ;;  %741 = vbcast.lane.b32.xlu1 %v735_v54, 264  ;;  %737 = vbcast.lane.b32.xlu0 %v735_v54, 256  ;;  %vm757_vm10 = vcmp.eq.s32.totalorder %v1797_v29, %v1709_v40  ;;  %vm756_vm11 = vcmp.eq.s32.totalorder %v1799_v31, %v1709_v40 }
 0x10e   :  { %v570_v10 = vadd.f32 %v569_v47, %v568_v60  ;;  %v275_v51 = vadd.f32 %v274_v42, %v273_v37  ;;  %v268_v27 = vadd.f32 %v267_v16, %v266_v33 }
 0x10f   :  { %v485_v57 = vpop.permute.xlu1 %484  ;;  %v481_v52 = vpop.permute.xlu0 %480 }
 0x110   :  { %v571_v44 = vrot.slane %v570_v10, 4  ;;  %v555_v2 = vsel %vm451_vm12, %v485_v57, 0.0  ;;  %v554_v7 = vsel %vm450_vm13, %v481_v52, 0.0  ;;  %v276_v37 = vrot.slane %v275_v51, 2 }
 0x111   :  { %v578_v8 = vsel %vm262_vm4, %v555_v2, 0.0  ;;  %834 = vbcast.lane.b32.xlu1 %v828_v58, 264  ;;  %830 = vbcast.lane.b32.xlu0 %v828_v58, 256  ;;  %v577_v54 = vsel %vm260_vm5, %v554_v7, 0.0  ;;  %v269_v16 = vrot.slane %v268_v27, 1  ;;  %vm149_vm12 = vcmp.eq.s32.totalorder %v1805_v34, %v1709_v40 }
 0x112   :  { %v572_v61 = vadd.f32 %v571_v44, %v570_v10  ;;  %v579_v55 = vadd.f32 %v578_v8, %v577_v54  ;;  %v277_v52 = vadd.f32 %v276_v37, %v275_v51  ;;  %vm148_vm13 = vcmp.eq.s32.totalorder %v1807_v36, %v1709_v40 }
 0x113   :  { %v188_v50 = vpop.permute.xlu1 %187  ;;  %v184_v62 = vpop.permute.xlu0 %183  ;;  %v270_v9 = vadd.f32 %v269_v16, %v268_v27  ;;  %v1041_v34 = vrot.slane %v1697_v35, %v1704_v38 }
 0x114   :  { %v573_v42 = vrot.slane %v572_v61, 2  ;;  %v249_v43 = vsel %vm145_vm14, %v188_v50, 0.0  ;;  %v248_v49 = vsel %vm144_vm15, %v184_v62, 0.0  ;;  %v580_v47 = vrot.slane %v579_v55, 4 }
 0x115   :  { %v281_v60 = vsel %vm262_vm4, %v249_v43, 0.0  ;;  %v280_v33 = vsel %vm260_vm5, %v248_v49, 0.0  ;;  %1025 = vbcast.lane.b32.xlu1 %v1019_v13, 264  ;;  %1021 = vbcast.lane.b32.xlu0 %v1019_v13, 256  ;;  %v278_v11 = vrot.slane %v277_v52, 1  ;;  %vm457_vm14 = vcmp.eq.s32.totalorder %v1811_v39, %v1709_v40 }
 0x116   :  { %v574_v10 = vadd.f32 %v573_v42, %v572_v61  ;;  %v282_v57 = vadd.f32 %v281_v60, %v280_v33  ;;  %v581_v58 = vadd.f32 %v580_v47, %v579_v55  ;;  %vm456_vm15 = vcmp.eq.s32.totalorder %v1813_v41, %v1709_v40 }
 0x117   :  { %v496_v3 = vpop.permute.xlu1 %495  ;;  %v492_v44 = vpop.permute.xlu0 %491  ;;  %v279_v15 = vadd.f32 %v278_v11, %v277_v52  ;;  %v1052_v41 = vrot.slane %v1697_v35, %v1833_v53 }
 0x118   :  { %v575_v2 = vrot.slane %v574_v10, 1  ;;  %v283_v8 = vrot.slane %v282_v57, 4  ;;  %v557_v7 = vsel %vm453_vm0, %v496_v3, 0.0  ;;  %v556_v13 = vsel %vm452_vm1, %v492_v44, 0.0 }
 0x119   :  { %v582_v54 = vrot.slane %v581_v58, 2  ;;  %v587_v61 = vsel %vm262_vm4, %v557_v7, 0.0  ;;  %v586_v50 = vsel %vm260_vm5, %v556_v13, 0.0  ;;  %1118 = vbcast.lane.b32.xlu1 %v1112_v1, 264  ;;  %1114 = vbcast.lane.b32.xlu0 %v1112_v1, 256  ;;  %vm759_vm0 = vcmp.eq.s32.totalorder %v1824_v46, %v1709_v40 }
 0x11a   :  { %v576_v51 = vadd.f32 %v575_v2, %v574_v10  ;;  %v284_v37 = vadd.f32 %v283_v8, %v282_v57  ;;  %v588_v55 = vadd.f32 %v587_v61, %v586_v50  ;;  %v839_v10 = vrot.slane %v1763_v4, %v1704_v38 }
 0x11b   :  { %v583_v62 = vadd.f32 %v582_v54, %v581_v58  ;;  %v199_v42 = vpop.permute.xlu1 %198  ;;  %v195_v43 = vpop.permute.xlu0 %194  ;;  %v1030_v54 = vrot.slane %v1697_v35, %v1686_v30  ;;  %vm758_vm1 = vcmp.eq.s32.totalorder %v1826_v48, %v1709_v40  ;;  %v1500_v48 = vld [vmem:[#allocation2 + $0x30] ss:$0 sps:$4 sm:$0x33]  }
 0x11c   :  { %v1929_v49 = vadd.f32 %v576_v51, %v270_v9  ;;  %v285_v47 = vrot.slane %v284_v37, 2  ;;  %v589_v60 = vrot.slane %v588_v55, 4  ;;  %v251_v33 = vsel %vm147_vm2, %v199_v42, 0.0 }
 0x11d   :  { %v584_v23 = vrot.slane %v583_v62, 1  ;;  %v290_v27 = vsel %vm262_vm4, %v251_v33, 0.0  ;;  %v250_v16 = vsel %vm146_vm3, %v195_v43, 0.0  ;;  %752 = vbcast.lane.b32.xlu1 %v746_v19, 264  ;;  %748 = vbcast.lane.b32.xlu0 %v746_v19, 256  ;;  %vm151_vm2 = vcmp.eq.s32.totalorder %v1835_v56, %v1709_v40 }
 0x11e   :  { %v286_v14 = vadd.f32 %v285_v47, %v284_v37  ;;  %v590_v57 = vadd.f32 %v589_v60, %v588_v55  ;;  %v289_v1 = vsel %vm260_vm5, %v250_v16, 0.0  ;;  %vm150_vm3 = vcmp.eq.s32.totalorder %v1837_v59, %v1709_v40 }
 0x11f   :  { %v585_v58 = vadd.f32 %v584_v23, %v583_v62  ;;  %v291_v3 = vadd.f32 %v290_v27, %v289_v1  ;;  %v507_v44 = vpop.permute.xlu1 %506  ;;  %v503_v2 = vpop.permute.xlu0 %502  ;;  %v1123_v1 = vrot.slane %v1822_v45, %v1677_v26 }
 0x120   :  { %v591_v8 = vrot.slane %v590_v57, 2  ;;  %v559_v7 = vsel %vm455_vm6, %v507_v44, 0.0  ;;  %v558_v13 = vsel %vm454_vm7, %v503_v2, 0.0  ;;  %v287_v52 = vrot.slane %v286_v14, 1 }
 0x121   :  { %v1941_v61 = vadd.f32 %v585_v58, %v279_v15  ;;  %v292_v50 = vrot.slane %v291_v3, 4  ;;  %v596_v19 = vsel %vm262_vm4, %v559_v7, 0.0  ;;  %v595_v20 = vsel %vm260_vm5, %v558_v13, 0.0  ;;  %845 = vbcast.lane.b32.xlu1 %v839_v10, 264  ;;  %841 = vbcast.lane.b32.xlu0 %v839_v10, 256 }
 0x122   :  { %v592_v9 = vadd.f32 %v591_v8, %v590_v57  ;;  %v597_v51 = vadd.f32 %v596_v19, %v595_v20  ;;  %v288_v23 = vadd.f32 %v287_v52, %v286_v14  ;;  %vm1354_vm6 = vcmask 1041408  }
 0x123   :  { %v293_v21 = vadd.f32 %v292_v50, %v291_v3  ;;  %v780_v37 = vpop.permute.xlu1 %779  ;;  %v776_v55 = vpop.permute.xlu0 %775  ;;  %v850_v50 = vrot.slane %v1763_v4, %v1833_v53  ;;  %vm459_vm7 = vcmp.eq.s32.totalorder %v1841_v5, %v1709_v40 }
 0x124   :  { %v593_v11 = vrot.slane %v592_v9, 1  ;;  %v598_v62 = vrot.slane %v597_v51, 4  ;;  %v859_v42 = vsel %vm755_vm8, %v780_v37, 0.0  ;;  %v858_v43 = vsel %vm754_vm9, %v776_v55, 0.0 }
 0x125   :  { %v294_v47 = vrot.slane %v293_v21, 2  ;;  %v875_v60 = vsel %vm262_vm4, %v859_v42, 0.0  ;;  %v874_v33 = vsel %vm260_vm5, %v858_v43, 0.0  ;;  %1036 = vbcast.lane.b32.xlu1 %v1030_v54, 264  ;;  %1032 = vbcast.lane.b32.xlu0 %v1030_v54, 256  ;;  %vm458_vm8 = vcmp.eq.s32.totalorder %v1843_v63, %v1709_v40 }
 0x126   :  { %v594_v27 = vadd.f32 %v593_v11, %v592_v9  ;;  %v599_v16 = vadd.f32 %v598_v62, %v597_v51  ;;  %v876_v24 = vadd.f32 %v875_v60, %v874_v33  ;;  %vm761_vm9 = vcmp.eq.s32.totalorder %v1849_v0, %v1709_v40 }
 0x127   :  { %v295_v10 = vadd.f32 %v294_v47, %v293_v21  ;;  %v791_v25 = vpop.permute.xlu1 %790  ;;  %v787_v57 = vpop.permute.xlu0 %786 }
 0x128   :  { %v1957_v15 = vadd.f32 %v594_v27, %v288_v23  ;;  %v600_v58 = vrot.slane %v599_v16, 2  ;;  %v877_v3 = vrot.slane %v876_v24, 4  ;;  %v861_v14 = vsel %vm757_vm10, %v791_v25, 0.0 }
 0x129   :  { %v884_v44 = vsel %vm262_vm4, %v861_v14, 0.0  ;;  %v860_v2 = vsel %vm756_vm11, %v787_v57, 0.0  ;;  %1129 = vbcast.lane.b32.xlu1 %v1123_v1, 264  ;;  %1125 = vbcast.lane.b32.xlu0 %v1123_v1, 256  ;;  %v296_v8 = vrot.slane %v295_v10, 1  ;;  %vm760_vm10 = vcmp.eq.s32.totalorder %v1851_v6, %v1709_v40 }
 0x12a   :  { %v601_v29 = vadd.f32 %v600_v58, %v599_v16  ;;  %v878_v7 = vadd.f32 %v877_v3, %v876_v24  ;;  %v883_v13 = vsel %vm260_vm5, %v860_v2, 0.0  ;;  %vm1578_vm11 = vmmov 0  }
 0x12b   :  { %v885_v31 = vadd.f32 %v884_v44, %v883_v13  ;;  %v210_v26 = vpop.permute.xlu1 %209  ;;  %v206_v54 = vpop.permute.xlu0 %205  ;;  %v297_v55 = vadd.f32 %v296_v8, %v295_v10  ;;  %v1134_v10 = vrot.slane %v1822_v45, %v1686_v30 }
 0x12c   :  { %v602_v19 = vrot.slane %v601_v29, 1  ;;  %v879_v20 = vrot.slane %v878_v7, 2  ;;  %v253_v52 = vsel %vm149_vm12, %v210_v26, 0.0  ;;  %v252_v9 = vsel %vm148_vm13, %v206_v54, 0.0 }
 0x12d   :  { %v886_v51 = vrot.slane %v885_v31, 4  ;;  %v299_v21 = vsel %vm262_vm4, %v253_v52, 0.0  ;;  %v298_v37 = vsel %vm260_vm5, %v252_v9, 0.0  ;;  %856 = vbcast.lane.b32.xlu1 %v850_v50, 264  ;;  %852 = vbcast.lane.b32.xlu0 %v850_v50, 256  ;;  %v1577_v9 = vmov 0.0  }
 0x12e   :  { %v603_v36 = vadd.f32 %v602_v19, %v601_v29  ;;  %v880_v11 = vadd.f32 %v879_v20, %v878_v7  ;;  %v300_v62 = vadd.f32 %v299_v21, %v298_v37  ;;  %1470 = vmatprep.subr.bf16.mxu0 %v1577_v9  ;;  %1484 = vmatprep.mubr.msk.bf16.mxu0 %vm1578_vm11, %v1577_v9 }
 0x12f   :  { %v887_v42 = vadd.f32 %v886_v51, %v885_v31  ;;  %v518_v4 = vpop.permute.xlu1 %517  ;;  %v514_v43 = vpop.permute.xlu0 %513  ;;  %vm1061_vm12 = vcmp.eq.s32.totalorder %v1857_v12, %v1709_v40  ;;  %vm1060_vm13 = vcmp.eq.s32.totalorder %v1859_v17, %v1709_v40 }
 0x130   :  { %v1975_v47 = vadd.f32 %v603_v36, %v297_v55  ;;  %v881_v60 = vrot.slane %v880_v11, 1  ;;  %v301_v33 = vrot.slane %v300_v62, 4  ;;  %v561_v23 = vsel %vm457_vm14, %v518_v4, 0.0  ;;  %v1501_v4 = vld [vmem:[#allocation2 + $0x28] sm:$0xff]  }
 0x131   :  { %v888_v27 = vrot.slane %v887_v42, 2  ;;  %v605_v16 = vsel %vm262_vm4, %v561_v23, 0.0  ;;  %v560_v24 = vsel %vm456_vm15, %v514_v43, 0.0  ;;  %1047 = vbcast.lane.b32.xlu1 %v1041_v34, 264  ;;  %1043 = vbcast.lane.b32.xlu0 %v1041_v34, 256  ;;  %v1356_v55 = vsel %vm1354_vm6, %v1500_v48, 0 }
 0x132   :  { %v882_v39 = vadd.f32 %v881_v60, %v880_v11  ;;  %v302_v25 = vadd.f32 %v301_v33, %v300_v62  ;;  %v604_v57 = vsel %vm260_vm5, %v560_v24, 0.0  ;;  %1471 = vmatpush3.bf16.msra.mxu0 %v1356_v55  ;;  %vm1063_vm14 = vcmp.eq.s32.totalorder %v1863_v18, %v1709_v40 }
 0x133   :  { %v889_v1 = vadd.f32 %v888_v27, %v887_v42  ;;  %v606_v58 = vadd.f32 %v605_v16, %v604_v57  ;;  %v802_v3 = vpop.permute.xlu1 %801  ;;  %v798_v14 = vpop.permute.xlu0 %797  ;;  %1472 = vmatprep.subr.bf16.mxu0 %v1577_v9  ;;  %v1156_v16 = vrot.slane %v1822_v45, %v1833_v53  ;;  %vm1062_vm15 = vcmp.eq.s32.totalorder %v1865_v22, %v1709_v40 }
 0x134   :  { %v1988_v44 = vadd.f32 %v882_v39, %v1929_v49  ;;  %v303_v30 = vrot.slane %v302_v25, 2  ;;  %v863_v2 = vsel %vm759_vm0, %v802_v3, 0.0  ;;  %v862_v8 = vsel %vm758_vm1, %v798_v14, 0.0 }
 0x135   :  { %v890_v29 = vrot.slane %v889_v1, 1  ;;  %v607_v7 = vrot.slane %v606_v58, 4  ;;  %v893_v35 = vsel %vm262_vm4, %v863_v2, 0.0  ;;  %v892_v13 = vsel %vm260_vm5, %v862_v8, 0.0  ;;  %1140 = vbcast.lane.b32.xlu1 %v1134_v10, 264  ;;  %1136 = vbcast.lane.b32.xlu0 %v1134_v10, 256 }
 0x136   :  { %v304_v46 = vadd.f32 %v303_v30, %v302_v25  ;;  %v894_v31 = vadd.f32 %v893_v35, %v892_v13  ;;  %1473 = vmatpush3.bf16.msra.mxu0 %v1501_v4  ;;  %v1502_v25 = vld [vmem:[#allocation2 + $0x20] sm:$0xff]   ;;  %v1503_v2 = vld [vmem:[#allocation2 + $0x18] sm:$0xff]   ;;  %vm153_vm0 = vcmp.eq.s32.totalorder %v1869_v28, %v1709_v40  ;;  %vm152_vm1 = vcmp.eq.s32.totalorder %v1871_v32, %v1709_v40 }
 0x137   :  { %v891_v49 = vadd.f32 %v890_v29, %v889_v1  ;;  %v608_v26 = vadd.f32 %v607_v7, %v606_v58  ;;  %v221_v54 = vpop.permute.xlu1 %220  ;;  %v217_v50 = vpop.permute.xlu0 %216  ;;  %1474 = vmatprep.subr.bf16.mxu0 %v1577_v9  ;;  %vm1297_vm6 = vcmask 1041409  }
 0x138   :  { %v895_v19 = vrot.slane %v894_v31, 4  ;;  %v255_v20 = vsel %vm151_vm2, %v221_v54, 0.0  ;;  %v254_v52 = vsel %vm150_vm3, %v217_v50, 0.0  ;;  %v305_v36 = vrot.slane %v304_v46, 1 }
 0x139   :  { %v1998_v51 = vadd.f32 %v891_v49, %v1941_v61  ;;  %v609_v21 = vrot.slane %v608_v26, 2  ;;  %v308_v56 = vsel %vm262_vm4, %v255_v20, 0.0  ;;  %v307_v59 = vsel %vm260_vm5, %v254_v52, 0.0  ;;  %1058 = vbcast.lane.b32.xlu1 %v1052_v41, 264  ;;  %1054 = vbcast.lane.b32.xlu0 %v1052_v41, 256  ;;  %v1505_v52 = vld [vmem:[#allocation2 + $0x8] sm:$0xff]  }
 0x13a   :  { %v896_v37 = vadd.f32 %v895_v19, %v894_v31  ;;  %v309_v34 = vadd.f32 %v308_v56, %v307_v59  ;;  %v1145_v61 = vrot.slane %v1822_v45, %v1704_v38  ;;  %v306_v24 = vadd.f32 %v305_v36, %v304_v46  ;;  %1475 = vmatpush3.bf16.msra.mxu0 %v1502_v25  ;;  %v1504_v31 = vld [vmem:[#allocation2 + $0x10] sm:$0xff]  }
 0x13b   :  { %v610_v11 = vadd.f32 %v609_v21, %v608_v26  ;;  %v2002_v62 = vpop.permute.xlu1 %435  ;;  %v2004_v42 = vpop.permute.xlu0 %431  ;;  %1476 = vmatprep.subr.bf16.mxu0 %v1577_v9 }
 0x13c   :  { %v897_v43 = vrot.slane %v896_v37, 2  ;;  %v310_v60 = vrot.slane %v309_v34, 4  ;;  %vm461_vm2 = vcmp.eq.s32.totalorder %v2002_v62, %v1709_v40  ;;  %vm460_vm3 = vcmp.eq.s32.totalorder %v2004_v42, %v1709_v40 }
 0x13d   :  { %v611_v33 = vrot.slane %v610_v11, 1  ;;  %1151 = vbcast.lane.b32.xlu1 %v1145_v61, 264  ;;  %1147 = vbcast.lane.b32.xlu0 %v1145_v61, 256 }
 0x13e   :  { %v898_v23 = vadd.f32 %v897_v43, %v896_v37  ;;  %v311_v27 = vadd.f32 %v310_v60, %v309_v34  ;;  %1477 = vmatpush3.bf16.msra.mxu0 %v1503_v2 }
 0x13f   :  { %v612_v10 = vadd.f32 %v611_v33, %v610_v11  ;;  %v529_v38 = vpop.permute.xlu1 %528  ;;  %v525_v39 = vpop.permute.xlu0 %524  ;;  %1478 = vmatprep.subr.bf16.mxu0 %v1577_v9  ;;  %v1506_v11 = vld [vmem:[#allocation2] sm:$0xff]  }
 0x140   :  { %v899_v57 = vrot.slane %v898_v23, 1  ;;  %v563_v41 = vsel %vm459_vm7, %v529_v38, 0.0  ;;  %v562_v1 = vsel %vm458_vm8, %v525_v39, 0.0  ;;  %v312_v3 = vrot.slane %v311_v27, 2 }
 0x141   :  { %v2016_v58 = vadd.f32 %v612_v10, %v306_v24  ;;  %v614_v45 = vsel %vm262_vm4, %v563_v41, 0.0  ;;  %v613_v53 = vsel %vm260_vm5, %v562_v1, 0.0  ;;  %1162 = vbcast.lane.b32.xlu1 %v1156_v16, 264  ;;  %1158 = vbcast.lane.b32.xlu0 %v1156_v16, 256 }
 0x142   :  { %v900_v5 = vadd.f32 %v899_v57, %v898_v23  ;;  %v615_v14 = vadd.f32 %v614_v45, %v613_v53  ;;  %v313_v7 = vadd.f32 %v312_v3, %v311_v27  ;;  %1479 = vmatpush3.bf16.msra.mxu0 %v1504_v31 }
 0x143   :  { %v2020_v63 = vpop.permute.xlu1 %719  ;;  %v2022_v30 = vpop.permute.xlu0 %715  ;;  %1480 = vmatprep.subr.bf16.mxu0 %v1577_v9 }
 0x144   :  { %v2025_v8 = vadd.f32 %v900_v5, %v1957_v15  ;;  %v616_v29 = vrot.slane %v615_v14, 4  ;;  %v314_v0 = vrot.slane %v313_v7, 1  ;;  %vm763_vm7 = vcmp.eq.s32.totalorder %v2020_v63, %v1709_v40 }
 0x145   :  { %vm762_vm8 = vcmp.eq.s32.totalorder %v2022_v30, %v1709_v40 }
 0x146   :  { %v617_v35 = vadd.f32 %v616_v29, %v615_v14  ;;  %v315_v59 = vadd.f32 %v314_v0, %v313_v7  ;;  %1481 = vmatpush3.bf16.msra.mxu0 %v1505_v52 }
 0x147   :  { %v813_v13 = vpop.permute.xlu1 %812  ;;  %v809_v46 = vpop.permute.xlu0 %808  ;;  %1482 = vmatprep.subr.bf16.mxu0 %v1577_v9 }
 0x148   :  { %v618_v48 = vrot.slane %v617_v35, 2  ;;  %v865_v49 = vsel %vm761_vm9, %v813_v13, 0.0  ;;  %v864_v26 = vsel %vm760_vm10, %v809_v46, 0.0 }
 0x149   :  { %v902_v15 = vsel %vm262_vm4, %v865_v49, 0.0  ;;  %v901_v54 = vsel %vm260_vm5, %v864_v26, 0.0 }
 0x14a   :  { %v619_v50 = vadd.f32 %v618_v48, %v617_v35  ;;  %v903_v19 = vadd.f32 %v902_v15, %v901_v54  ;;  %1483 = vmatpush3.bf16.msra.mxu0 %v1506_v11 }
 0x14b   :  { %v2036_v20 = vpop.permute.xlu1 %1003  ;;  %v2038_v6 = vpop.permute.xlu0 %999 }
 0x14c   :  { %v620_v21 = vrot.slane %v619_v50, 1  ;;  %v904_v56 = vrot.slane %v903_v19, 4  ;;  %vm1065_vm9 = vcmp.eq.s32.totalorder %v2036_v20, %v1709_v40  ;;  %vm1064_vm10 = vcmp.eq.s32.totalorder %v2038_v6, %v1709_v40 }
 0x14e   :  { %v621_v37 = vadd.f32 %v620_v21, %v619_v50  ;;  %v905_v34 = vadd.f32 %v904_v56, %v903_v19 }
 0x14f   :  { %v1086_v55 = vpop.permute.xlu1 %1085  ;;  %v1082_v36 = vpop.permute.xlu0 %1081 }
 0x150   :  { %v2045_v61 = vadd.f32 %v621_v37, %v315_v59  ;;  %v906_v4 = vrot.slane %v905_v34, 2  ;;  %v1165_v43 = vsel %vm1061_vm12, %v1086_v55, 0.0  ;;  %v1164_v60 = vsel %vm1060_vm13, %v1082_v36, 0.0 }
 0x151   :  { %v1181_v33 = vsel %vm262_vm4, %v1165_v43, 0.0  ;;  %v1180_v23 = vsel %vm260_vm5, %v1164_v60, 0.0 }
 0x152   :  { %v907_v27 = vadd.f32 %v906_v4, %v905_v34  ;;  %v1182_v12 = vadd.f32 %v1181_v33, %v1180_v23 }
 0x153   :  { %v1097_v17 = vpop.permute.xlu1 %1096  ;;  %v1093_v16 = vpop.permute.xlu0 %1092 }
 0x154   :  { %v908_v24 = vrot.slane %v907_v27, 1  ;;  %v1183_v10 = vrot.slane %v1182_v12, 4  ;;  %v1167_v38 = vsel %vm1063_vm14, %v1097_v17, 0.0  ;;  %v1166_v39 = vsel %vm1062_vm15, %v1093_v16, 0.0 }
 0x155   :  { %v1190_v9 = vsel %vm262_vm4, %v1167_v38, 0.0  ;;  %v1189_v25 = vsel %vm260_vm5, %v1166_v39, 0.0 }
 0x156   :  { %v909_v57 = vadd.f32 %v908_v24, %v907_v27  ;;  %v1184_v41 = vadd.f32 %v1183_v10, %v1182_v12  ;;  %v1191_v1 = vadd.f32 %v1190_v9, %v1189_v25 }
 0x157   :  { %v2056_v45 = vpop.permute.xlu1 %138  ;;  %v2058_v18 = vpop.permute.xlu0 %134 }
 0x158   :  { %v2061_v22 = vadd.f32 %v909_v57, %v1975_v47  ;;  %v1185_v53 = vrot.slane %v1184_v41, 2  ;;  %v1192_v5 = vrot.slane %v1191_v1, 4  ;;  %vm155_vm11 = vcmp.eq.s32.totalorder %v2056_v45, %v1709_v40 }
 0x159   :  { %vm154_vm12 = vcmp.eq.s32.totalorder %v2058_v18, %v1709_v40 }
 0x15a   :  { %v1186_v3 = vadd.f32 %v1185_v53, %v1184_v41  ;;  %v1193_v14 = vadd.f32 %v1192_v5, %v1191_v1 }
 0x15b   :  { %v232_v2 = vpop.permute.xlu1 %231  ;;  %v228_v29 = vpop.permute.xlu0 %227 }
 0x15c   :  { %v1187_v7 = vrot.slane %v1186_v3, 1  ;;  %v1194_v35 = vrot.slane %v1193_v14, 2  ;;  %v257_v13 = vsel %vm153_vm0, %v232_v2, 0.0  ;;  %v256_v46 = vsel %vm152_vm1, %v228_v29, 0.0 }
 0x15d   :  { %v317_v31 = vsel %vm262_vm4, %v257_v13, 0.0  ;;  %v316_v47 = vsel %vm260_vm5, %v256_v46, 0.0  ;;  %vm1299_vm1 = vcmask 1042434  }
 0x15e   :  { %v1188_v48 = vadd.f32 %v1187_v7, %v1186_v3  ;;  %v1195_v49 = vadd.f32 %v1194_v35, %v1193_v14  ;;  %v318_v26 = vadd.f32 %v317_v31, %v316_v47 }
 0x15f   :  { %v2069_v15 = vpop.permute.xlu1 %446  ;;  %v2071_v54 = vpop.permute.xlu0 %442 }
 0x160   :  { %v1252_v28 = vadd.f32 %v1188_v48, %v1988_v44  ;;  %v1196_v32 = vrot.slane %v1195_v49, 1  ;;  %v319_v0 = vrot.slane %v318_v26, 4  ;;  %vm463_vm13 = vcmp.eq.s32.totalorder %v2069_v15, %v1709_v40 }
 0x161   :  { %vm462_vm14 = vcmp.eq.s32.totalorder %v2071_v54, %v1709_v40 }
 0x162   :  { %v1197_v50 = vadd.f32 %v1196_v32, %v1195_v49  ;;  %v320_v19 = vadd.f32 %v319_v0, %v318_v26  ;;  %v1260_v56 = vpack.c.bf16 %v1252_v28, %v1252_v28 }
 0x163   :  { %v540_v52 = vpop.permute.xlu1 %539  ;;  %v536_v21 = vpop.permute.xlu0 %535 }
 0x164   :  { %v1253_v59 = vadd.f32 %v1197_v50, %v1998_v51  ;;  %v565_v37 = vsel %vm461_vm2, %v540_v52, 0.0  ;;  %v564_v55 = vsel %vm460_vm3, %v536_v21, 0.0  ;;  %v321_v11 = vrot.slane %v320_v19, 2 }
 0x165   :  { %v623_v34 = vsel %vm262_vm4, %v565_v37, 0.0  ;;  %v622_v36 = vsel %vm260_vm5, %v564_v55, 0.0  ;;  %v1289_v60 = vunpack.c.l.b16 %v1260_v56 }
 0x166   :  { %v1261_v44 = vpack.c.bf16 %v1253_v59, %v1253_v59  ;;  %v624_v4 = vadd.f32 %v623_v34, %v622_v36  ;;  %v322_v51 = vadd.f32 %v321_v11, %v320_v19 }
 0x167   :  { %v2081_v62 = vpop.permute.xlu1 %730  ;;  %v2083_v43 = vpop.permute.xlu0 %726 }
 0x168   :  { %v1290_v33 = vunpack.c.l.b16 %v1261_v44  ;;  %v625_v42 = vrot.slane %v624_v4, 4  ;;  %v323_v25 = vrot.slane %v322_v51, 1  ;;  %vm765_vm15 = vcmp.eq.s32.totalorder %v2081_v62, %v1709_v40 }
 0x169   :  { %vm764_vm0 = vcmp.eq.s32.totalorder %v2083_v43, %v1709_v40 }
 0x16a   :  { %v2085_v23 = vsel %vm1297_vm6, %v1290_v33, %v1289_v60  ;;  %v626_v27 = vadd.f32 %v625_v42, %v624_v4  ;;  %v324_v5 = vadd.f32 %v323_v25, %v322_v51 }
 0x16b   :  { %v824_v12 = vpop.permute.xlu1 %823  ;;  %v820_v17 = vpop.permute.xlu0 %819 }
 0x16c   :  { %v867_v16 = vsel %vm763_vm7, %v824_v12, 0.0  ;;  %v866_v24 = vsel %vm762_vm8, %v820_v17, 0.0  ;;  %v627_v10 = vrot.slane %v626_v27, 2 }
 0x16d   :  { %v911_v38 = vsel %vm262_vm4, %v867_v16, 0.0  ;;  %v910_v39 = vsel %vm260_vm5, %v866_v24, 0.0 }
 0x16e   :  { %v912_v9 = vadd.f32 %v911_v38, %v910_v39  ;;  %v628_v57 = vadd.f32 %v627_v10, %v626_v27 }
 0x16f   :  { %v2093_v41 = vpop.permute.xlu1 %1014  ;;  %v2095_v63 = vpop.permute.xlu0 %1010 }
 0x170   :  { %v913_v1 = vrot.slane %v912_v9, 4  ;;  %v629_v30 = vrot.slane %v628_v57, 1  ;;  %vm1067_vm2 = vcmp.eq.s32.totalorder %v2093_v41, %v1709_v40  ;;  %vm1066_vm3 = vcmp.eq.s32.totalorder %v2095_v63, %v1709_v40 }
 0x172   :  { %v914_v53 = vadd.f32 %v913_v1, %v912_v9  ;;  %v630_v3 = vadd.f32 %v629_v30, %v628_v57 }
 0x173   :  { %v1108_v14 = vpop.permute.xlu1 %1107  ;;  %v1104_v2 = vpop.permute.xlu0 %1103 }
 0x174   :  { %v915_v29 = vrot.slane %v914_v53, 2  ;;  %v1169_v7 = vsel %vm1065_vm9, %v1108_v14, 0.0  ;;  %v1168_v35 = vsel %vm1064_vm10, %v1104_v2, 0.0  ;;  %v2101_v13 = vadd.f32 %v630_v3, %v324_v5 }
 0x175   :  { %v1199_v46 = vsel %vm262_vm4, %v1169_v7, 0.0  ;;  %v1198_v31 = vsel %vm260_vm5, %v1168_v35, 0.0  ;;  %vm1301_vm10 = vcmask 1043459  }
 0x176   :  { %v916_v47 = vadd.f32 %v915_v29, %v914_v53  ;;  %v1200_v48 = vadd.f32 %v1199_v46, %v1198_v31 }
 0x177   :  { %v243_v20 = vpop.permute.xlu1 %242  ;;  %v239_v6 = vpop.permute.xlu0 %238 }
 0x178   :  { %v917_v49 = vrot.slane %v916_v47, 1  ;;  %v1201_v26 = vrot.slane %v1200_v48, 4  ;;  %v259_v28 = vsel %vm155_vm11, %v243_v20, 0.0  ;;  %v258_v32 = vsel %vm154_vm12, %v239_v6, 0.0 }
 0x179   :  { %v326_v0 = vsel %vm262_vm4, %v259_v28, 0.0  ;;  %v325_v50 = vsel %vm260_vm5, %v258_v32, 0.0 }
 0x17a   :  { %v918_v19 = vadd.f32 %v917_v49, %v916_v47  ;;  %v1202_v52 = vadd.f32 %v1201_v26, %v1200_v48  ;;  %v327_v21 = vadd.f32 %v326_v0, %v325_v50 }
 0x17b   :  { %v551_v45 = vpop.permute.xlu1 %550  ;;  %v547_v18 = vpop.permute.xlu0 %546 }
 0x17c   :  { %v2116_v56 = vadd.f32 %v918_v19, %v2016_v58  ;;  %v1203_v59 = vrot.slane %v1202_v52, 2  ;;  %v328_v37 = vrot.slane %v327_v21, 4  ;;  %v567_v34 = vsel %vm463_vm13, %v551_v45, 0.0 }
 0x17d   :  { %v632_v55 = vsel %vm262_vm4, %v567_v34, 0.0  ;;  %v566_v44 = vsel %vm462_vm14, %v547_v18, 0.0 }
 0x17e   :  { %v1204_v36 = vadd.f32 %v1203_v59, %v1202_v52  ;;  %v329_v11 = vadd.f32 %v328_v37, %v327_v21  ;;  %v631_v4 = vsel %vm260_vm5, %v566_v44, 0.0 }
 0x17f   :  { %v633_v60 = vadd.f32 %v632_v55, %v631_v4  ;;  %v2120_v15 = vpop.permute.xlu1 %741  ;;  %v2122_v33 = vpop.permute.xlu0 %737 }
 0x180   :  { %v1205_v54 = vrot.slane %v1204_v36, 1  ;;  %v330_v42 = vrot.slane %v329_v11, 2  ;;  %vm767_vm6 = vcmp.eq.s32.totalorder %v2120_v15, %v1709_v40  ;;  %vm766_vm7 = vcmp.eq.s32.totalorder %v2122_v33, %v1709_v40 }
 0x181   :  { %v634_v51 = vrot.slane %v633_v60, 4 }
 0x182   :  { %v1206_v58 = vadd.f32 %v1205_v54, %v1204_v36  ;;  %v331_v27 = vadd.f32 %v330_v42, %v329_v11 }
 0x183   :  { %v635_v12 = vadd.f32 %v634_v51, %v633_v60  ;;  %v835_v17 = vpop.permute.xlu1 %834  ;;  %v831_v16 = vpop.permute.xlu0 %830 }
 0x184   :  { %v1254_v24 = vadd.f32 %v1206_v58, %v2025_v8  ;;  %v869_v10 = vsel %vm765_vm15, %v835_v17, 0.0  ;;  %v868_v38 = vsel %vm764_vm0, %v831_v16, 0.0  ;;  %v332_v62 = vrot.slane %v331_v27, 1 }
 0x185   :  { %v636_v39 = vrot.slane %v635_v12, 2  ;;  %v920_v9 = vsel %vm262_vm4, %v869_v10, 0.0  ;;  %v919_v25 = vsel %vm260_vm5, %v868_v38, 0.0 }
 0x186   :  { %v1262_v57 = vpack.c.bf16 %v1254_v24, %v1254_v24  ;;  %v921_v1 = vadd.f32 %v920_v9, %v919_v25  ;;  %v333_v29 = vadd.f32 %v332_v62, %v331_v27 }
 0x187   :  { %v637_v30 = vadd.f32 %v636_v39, %v635_v12  ;;  %v1026_v53 = vpop.permute.xlu1 %1025  ;;  %v1022_v43 = vpop.permute.xlu0 %1021 }
 0x188   :  { %v1291_v5 = vunpack.c.l.b16 %v1262_v57  ;;  %v922_v3 = vrot.slane %v921_v1, 4  ;;  %vm1069_vm8 = vcmp.eq.s32.totalorder %v1026_v53, %v1709_v40  ;;  %vm1068_vm9 = vcmp.eq.s32.totalorder %v1022_v43, %v1709_v40 }
 0x189   :  { %v638_v14 = vrot.slane %v637_v30, 1 }
 0x18a   :  { %v1300_v2 = vsel %vm1299_vm1, %v1291_v5, %v2085_v23  ;;  %v923_v8 = vadd.f32 %v922_v3, %v921_v1  ;;  %vm1303_vm1 = vcmask 1044484  }
 0x18b   :  { %v639_v7 = vadd.f32 %v638_v14, %v637_v30  ;;  %v1119_v35 = vpop.permute.xlu1 %1118  ;;  %v1115_v46 = vpop.permute.xlu0 %1114 }
 0x18c   :  { %v924_v31 = vrot.slane %v923_v8, 2  ;;  %v1171_v47 = vsel %vm1067_vm2, %v1119_v35, 0.0  ;;  %v1170_v48 = vsel %vm1066_vm3, %v1115_v46, 0.0 }
 0x18d   :  { %v2136_v20 = vadd.f32 %v639_v7, %v333_v29  ;;  %v1208_v6 = vsel %vm262_vm4, %v1171_v47, 0.0  ;;  %v1207_v23 = vsel %vm260_vm5, %v1170_v48, 0.0 }
 0x18e   :  { %v925_v49 = vadd.f32 %v924_v31, %v923_v8  ;;  %v1209_v26 = vadd.f32 %v1208_v6, %v1207_v23 }
 0x18f   :  { %v753_v28 = vpop.permute.xlu1 %752  ;;  %v749_v41 = vpop.permute.xlu0 %748 }
 0x190   :  { %v926_v32 = vrot.slane %v925_v49, 1  ;;  %v1210_v0 = vrot.slane %v1209_v26, 4  ;;  %vm769_vm11 = vcmp.eq.s32.totalorder %v753_v28, %v1709_v40  ;;  %vm768_vm12 = vcmp.eq.s32.totalorder %v749_v41, %v1709_v40 }
 0x192   :  { %v927_v63 = vadd.f32 %v926_v32, %v925_v49  ;;  %v1211_v50 = vadd.f32 %v1210_v0, %v1209_v26 }
 0x193   :  { %v846_v19 = vpop.permute.xlu1 %845  ;;  %v842_v52 = vpop.permute.xlu0 %841 }
 0x194   :  { %v2141_v21 = vadd.f32 %v927_v63, %v2045_v61  ;;  %v1212_v45 = vrot.slane %v1211_v50, 2  ;;  %v871_v44 = vsel %vm767_vm6, %v846_v19, 0.0  ;;  %v870_v36 = vsel %vm766_vm7, %v842_v52, 0.0 }
 0x195   :  { %v929_v33 = vsel %vm262_vm4, %v871_v44, 0.0  ;;  %v928_v58 = vsel %vm260_vm5, %v870_v36, 0.0  ;;  %vm1305_vm6 = vcmask 1045509   ;;  %vm1309_vm7 = vcmask 1047559  }
 0x196   :  { %v1213_v18 = vadd.f32 %v1212_v45, %v1211_v50  ;;  %v930_v10 = vadd.f32 %v929_v33, %v928_v58 }
 0x197   :  { %v1037_v59 = vpop.permute.xlu1 %1036  ;;  %v1033_v37 = vpop.permute.xlu0 %1032 }
 0x198   :  { %v1214_v34 = vrot.slane %v1213_v18, 1  ;;  %v931_v53 = vrot.slane %v930_v10, 4  ;;  %vm1071_vm13 = vcmp.eq.s32.totalorder %v1037_v59, %v1709_v40  ;;  %vm1070_vm14 = vcmp.eq.s32.totalorder %v1033_v37, %v1709_v40 }
 0x19a   :  { %v1215_v55 = vadd.f32 %v1214_v34, %v1213_v18  ;;  %v932_v7 = vadd.f32 %v931_v53, %v930_v10 }
 0x19b   :  { %v1130_v61 = vpop.permute.xlu1 %1129  ;;  %v1126_v11 = vpop.permute.xlu0 %1125 }
 0x19c   :  { %v1255_v4 = vadd.f32 %v1215_v55, %v2061_v22  ;;  %v1173_v60 = vsel %vm1069_vm8, %v1130_v61, 0.0  ;;  %v1172_v54 = vsel %vm1068_vm9, %v1126_v11, 0.0  ;;  %v933_v28 = vrot.slane %v932_v7, 2 }
 0x19d   :  { %v1217_v42 = vsel %vm262_vm4, %v1173_v60, 0.0  ;;  %v1216_v15 = vsel %vm260_vm5, %v1172_v54, 0.0 }
 0x19e   :  { %v1263_v51 = vpack.c.bf16 %v1255_v4, %v1255_v4  ;;  %v1218_v27 = vadd.f32 %v1217_v42, %v1216_v15  ;;  %v934_v59 = vadd.f32 %v933_v28, %v932_v7 }
 0x19f   :  { %v857_v12 = vpop.permute.xlu1 %856  ;;  %v853_v17 = vpop.permute.xlu0 %852 }
 0x1a0   :  { %v1292_v16 = vunpack.c.l.b16 %v1263_v51  ;;  %v1219_v22 = vrot.slane %v1218_v27, 4  ;;  %v873_v24 = vsel %vm769_vm11, %v857_v12, 0.0  ;;  %v872_v38 = vsel %vm768_vm12, %v853_v17, 0.0 }
 0x1a1   :  { %v938_v25 = vsel %vm262_vm4, %v873_v24, 0.0  ;;  %v937_v57 = vsel %vm260_vm5, %v872_v38, 0.0  ;;  %v935_v15 = vrot.slane %v934_v59, 1 }
 0x1a2   :  { %v1302_v39 = vsel %vm1301_vm10, %v1292_v16, %v1300_v2  ;;  %v1220_v9 = vadd.f32 %v1219_v22, %v1218_v27  ;;  %v939_v5 = vadd.f32 %v938_v25, %v937_v57 }
 0x1a3   :  { %v1048_v1 = vpop.permute.xlu1 %1047  ;;  %v1044_v62 = vpop.permute.xlu0 %1043 }
 0x1a4   :  { %v1221_v30 = vrot.slane %v1220_v9, 2  ;;  %v940_v47 = vrot.slane %v939_v5, 4  ;;  %vm1073_vm15 = vcmp.eq.s32.totalorder %v1048_v1, %v1709_v40  ;;  %vm1072_vm0 = vcmp.eq.s32.totalorder %v1044_v62, %v1709_v40 }
 0x1a6   :  { %v1222_v43 = vadd.f32 %v1221_v30, %v1220_v9  ;;  %v941_v32 = vadd.f32 %v940_v47, %v939_v5 }
 0x1a7   :  { %v1141_v3 = vpop.permute.xlu1 %1140  ;;  %v1137_v14 = vpop.permute.xlu0 %1136 }
 0x1a8   :  { %v1223_v8 = vrot.slane %v1222_v43, 1  ;;  %v1175_v29 = vsel %vm1071_vm13, %v1141_v3, 0.0  ;;  %v1174_v2 = vsel %vm1070_vm14, %v1137_v14, 0.0  ;;  %v942_v34 = vrot.slane %v941_v32, 2 }
 0x1a9   :  { %v1226_v35 = vsel %vm262_vm4, %v1175_v29, 0.0  ;;  %v1225_v46 = vsel %vm260_vm5, %v1174_v2, 0.0 }
 0x1aa   :  { %v1224_v31 = vadd.f32 %v1223_v8, %v1222_v43  ;;  %v1227_v48 = vadd.f32 %v1226_v35, %v1225_v46  ;;  %v943_v58 = vadd.f32 %v942_v34, %v941_v32 }
 0x1ab   :  { %v1059_v6 = vpop.permute.xlu1 %1058  ;;  %v1055_v23 = vpop.permute.xlu0 %1054 }
 0x1ac   :  { %v1256_v49 = vadd.f32 %v1224_v31, %v2116_v56  ;;  %v1228_v26 = vrot.slane %v1227_v48, 4  ;;  %vm1075_vm2 = vcmp.eq.s32.totalorder %v1059_v6, %v1709_v40  ;;  %vm1074_vm3 = vcmp.eq.s32.totalorder %v1055_v23, %v1709_v40 }
 0x1ad   :  { %v936_v40 = vadd.f32 %v935_v15, %v934_v59  ;;  %v944_v10 = vrot.slane %v943_v58, 1 }
 0x1ae   :  { %v1264_v41 = vpack.c.bf16 %v1256_v49, %v1256_v49  ;;  %v1229_v0 = vadd.f32 %v1228_v26, %v1227_v48 }
 0x1af   :  { %v1152_v63 = vpop.permute.xlu1 %1151  ;;  %v1148_v50 = vpop.permute.xlu0 %1147  ;;  %v952_v62 = vadd.f32 %v936_v40, %v2101_v13  ;;  %v945_v30 = vadd.f32 %v944_v10, %v943_v58 }
 0x1b0   :  { %v1293_v19 = vunpack.c.l.b16 %v1264_v41  ;;  %v1230_v52 = vrot.slane %v1229_v0, 2  ;;  %v1177_v45 = vsel %vm1073_vm15, %v1152_v63, 0.0  ;;  %v1176_v18 = vsel %vm1072_vm0, %v1148_v50, 0.0 }
 0x1b1   :  { %v1235_v37 = vsel %vm262_vm4, %v1177_v45, 0.0  ;;  %v1234_v56 = vsel %vm260_vm5, %v1176_v18, 0.0 }
 0x1b2   :  { %v1231_v55 = vadd.f32 %v1230_v52, %v1229_v0  ;;  %v1236_v44 = vadd.f32 %v1235_v37, %v1234_v56  ;;  %v1304_v36 = vsel %vm1303_vm1, %v1293_v19, %v1302_v39 }
 0x1b3   :  { %v1163_v61 = vpop.permute.xlu1 %1162  ;;  %v1159_v11 = vpop.permute.xlu0 %1158 }
 0x1b4   :  { %v1232_v4 = vrot.slane %v1231_v55, 1  ;;  %v1237_v60 = vrot.slane %v1236_v44, 4  ;;  %v1179_v54 = vsel %vm1075_vm2, %v1163_v61, 0.0  ;;  %v1178_v42 = vsel %vm1074_vm3, %v1159_v11, 0.0 }
 0x1b5   :  { %v1244_v51 = vsel %vm262_vm4, %v1179_v54, 0.0  ;;  %v1243_v33 = vsel %vm260_vm5, %v1178_v42, 0.0  ;;  %vm1307_vm4 = vcmask 1046534  }
 0x1b6   :  { %v1233_v27 = vadd.f32 %v1232_v4, %v1231_v55  ;;  %v1238_v12 = vadd.f32 %v1237_v60, %v1236_v44  ;;  %v1245_v17 = vadd.f32 %v1244_v51, %v1243_v33 }
 0x1b8   :  { %v1257_v16 = vadd.f32 %v1233_v27, %v2141_v21  ;;  %v1239_v22 = vrot.slane %v1238_v12, 2  ;;  %v1246_v24 = vrot.slane %v1245_v17, 4  ;;  %v953_v21 = vadd.f32 %v945_v30, %v2136_v20 }
 0x1ba   :  { %v1265_v38 = vpack.c.bf16 %v1257_v16, %v1257_v16  ;;  %v1240_v39 = vadd.f32 %v1239_v22, %v1238_v12  ;;  %v1247_v9 = vadd.f32 %v1246_v24, %v1245_v17 }
 0x1bc   :  { %v1294_v25 = vunpack.c.l.b16 %v1265_v38  ;;  %v1241_v57 = vrot.slane %v1240_v39, 1  ;;  %v1248_v1 = vrot.slane %v1247_v9, 2 }
 0x1be   :  { %v1242_v53 = vadd.f32 %v1241_v57, %v1240_v39  ;;  %v1249_v43 = vadd.f32 %v1248_v1, %v1247_v9  ;;  %v1306_v5 = vsel %vm1305_vm6, %v1294_v25, %v1304_v36 }
 0x1c0   :  { %v1258_v3 = vadd.f32 %v1242_v53, %v952_v62  ;;  %v1250_v14 = vrot.slane %v1249_v43, 1 }
 0x1c2   :  { %v1266_v8 = vpack.c.bf16 %v1258_v3, %v1258_v3  ;;  %v1251_v29 = vadd.f32 %v1250_v14, %v1249_v43 }
 0x1c4   :  { %v1295_v2 = vunpack.c.l.b16 %v1266_v8  ;;  %v1259_v7 = vadd.f32 %v1251_v29, %v953_v21 }
 0x1c6   :  { %v1267_v35 = vpack.c.bf16 %v1259_v7, %v1259_v7  ;;  %v1308_v46 = vsel %vm1307_vm4, %v1295_v2, %v1306_v5 }
 0x1c8   :  { %v1296_v31 = vunpack.c.l.b16 %v1267_v35 }
 0x1ca   :  { %v1310_v47 = vsel %vm1309_vm7, %v1296_v31, %v1308_v46 }
 0x1cb   :  { %v1311_v48 = vpack.c.b16 %v1310_v47, %v1310_v47 }
 0x1cd   :  { %1485 = vmatmul.mubr.msk.bf16.vlgmr.msra.gmra.mxu0 %vm260_vm5, %v1311_v48 }
 0x28d   :  { %v1392_v13 = vpop.f32.mrf.mxu0 }
 0x28e   :  { %1398 = vst [vmem:[#allocation5] sm:$0xff] %v1392_v13  ;;  %1399 = vadd.xlane.f32.xlu0 %v1392_v13 }
 0x28f   :  { %v1486_v6 = vpop.f32.mrf.mxu0 }
 0x291   :  { %v1395_v23 = vpop.f32.mrf.mxu0 }
 0x293   :  { %v1487_v49 = vpop.f32.mrf.mxu0 }
 0x294   :  { %1538 = shalt.err (!%p1535_p9)
}
 0x295   :  { %1421 = dma.vmem_to_hbm [thread:$0]  %s1419_s21, 128, %s2185_s4, [#allocation4]   ;;  %vm1410_vm5 = vcmask 0  }
 0x296   :  { %s1580_s25 = smov [#allocation6]  }
 0x297   :  { %s1428_s26 = sshll.u32 %s1580_s25, 4  ;;  %s1429_s26 = int_to_ptr.vmem [resolvable:$true] %s1428_s26 }
 0x298   :  { %s1547_s28 = scalar_lea.vmem %s1429_s26, 16  ;;  %s1551_s3 = scalar_lea.vmem %s1429_s26, 32 }
 0x299   :  { %p1548_p10 = scmp.ne.s32.totalorder %s1429_s26, %s1547_s28  ;;  %p1552_p11 = scmp.lt.s32.totalorder %s1429_s26, %s1429_s26 }
 0x29a   :  { %p1553_p12 = scmp.lt.s32.totalorder %s1551_s3, %s1547_s28 }
 0x29c   :  { %p1554_p13 = por %p1553_p12, %p1552_p11 }
 0x29e   :  { %p1555_p0 = pnand %p1554_p13, %p1548_p10 }
 0x317   :  { %v1400_v20 = vpop.xlane.xlu0 %1399 }
 0x318   :  { %v1401_v26 = vrot.slane %v1400_v20, 4 }
 0x31a   :  { %v1402_v28 = vadd.f32 %v1401_v26, %v1400_v20 }
 0x31c   :  { %v1403_v41 = vrot.slane %v1402_v28, 2 }
 0x31e   :  { %v1404_v32 = vadd.f32 %v1403_v41, %v1402_v28 }
 0x320   :  { %v1405_v0 = vrot.slane %v1404_v32, 1 }
 0x322   :  { %v1406_v63 = vadd.f32 %v1405_v0, %v1404_v32 }
 0x324   :  { %1488 = vpush %v1406_v63 }
 0x355   :  { %s1489_s27 = spop %1488 }
 0x356   :  { %v1408_v50 = vstv %s1489_s27 }
 0x357   :  { %v1409_v19 = vmul.f32 0.003125, %v1408_v50 }
 0x359   :  { %1411 = vst.msk [vmem:[#allocation6] sm:$0x1] %vm1410_vm5, %v1409_v19 }
 0x35a   :  { %1558 = shalt.err (!%p1555_p0)
}
 0x35b   :  { %1431 = dma.vmem_to_hbm [thread:$0]  %s1429_s26, 16, %s2186_s5, [#allocation7]  }
 0x35c   :  { %1569 = dma.done.wait [#allocation4], 128  }
 0x35d   :  { %1570 = vsyncadd [#allocation4], 4294967168 }
 0x35e   :  { %1571 = dma.done.wait [#allocation7], 16  }
 0x35f   :  { %1572 = vsyncadd [#allocation7], 4294967280 }
 0x360   :  { %1438 = vsyncpa [#allocation3], 1 }
 0x361   :  { %1439 = vsyncpa [#allocation4], 1 }
 0x362   :  { %1440 = vsyncpa [#allocation7], 1 }

</bundles_post_ra>
